<compile_context>
chip_gen: v6e
topology: v6e:2x2x1
jax: 0.10.0
libtpu: 0.0.40
codegen_flags: <defaults>
</compile_context>

<pallas_src>
import numpy as np
import jax
import jax.numpy as jnp
from jax.experimental import pallas as pl
from jax.experimental.pallas import tpu as pltpu

C_IN, C_OUT, KH, KW = 33, 23, 3, 3
STRIDE, PAD = 7, 1
NEG_SLOPE = 0.0625
N_COL_RAW = C_OUT * KH * KW          # 207
N_COL = 256                          # padded: lane-dense + MXU-aligned


def gemm_bias_lrelu_kernel(x_ref, w_ref, b_ref, o_ref):
    # (TM, C_in) @ (C_in, 256) on the MXU, fused bias + LeakyReLU epilogue.
    acc = jnp.dot(x_ref[...], w_ref[...], preferred_element_type=jnp.float32)
    v = acc + b_ref[...]                      # (1, 256) row broadcast over TM
    o_ref[...] = jnp.where(v > 0, v, v * NEG_SLOPE)


@jax.jit
def conv_transpose_leaky(x, weight, bias):
    # x: (N, C_in, H, W) f32; weight: (C_in, C_out, KH, KW); bias: (C_out,)
    N, Cin, H, W = x.shape
    H_out = (H - 1) * STRIDE - 2 * PAD + KH
    W_out = (W - 1) * STRIDE - 2 * PAD + KW

    M = N * H * W
    TM = 512 if M >= 1024 else 128            # big tiles: fewer grid steps
    M_pad = pl.cdiv(M, TM) * TM

    # One-time layout glue (cheap at these sizes): NCHW -> (M, C_in)
    x2d = x.transpose(0, 2, 3, 1).reshape(M, Cin)
    x2d = jnp.pad(x2d, ((0, M_pad - M), (0, 0)))

    # Weight as (C_in, 256); columns 207..255 are zero and dropped in the glue.
    w2d = weight.reshape(Cin, N_COL_RAW)
    w2d = jnp.pad(w2d, ((0, 0), (0, N_COL - N_COL_RAW)))

    # Bias expanded per GEMM column: col = co*9 + kh*3 + kw -> bias[co]
    b_cols = jnp.repeat(bias, KH * KW)
    b_cols = jnp.pad(b_cols, (0, N_COL - N_COL_RAW)).reshape(1, N_COL)

    gemm = pl.pallas_call(
        gemm_bias_lrelu_kernel,
        out_shape=jax.ShapeDtypeStruct((M_pad, N_COL), jnp.float32),
        grid=(M_pad // TM,),
        in_specs=[pl.BlockSpec((TM, Cin), lambda i: (i, 0)),
                  pl.BlockSpec((Cin, N_COL), lambda i: (0, 0)),
                  pl.BlockSpec((1, N_COL), lambda i: (0, 0))],
        out_specs=pl.BlockSpec((TM, N_COL), lambda i: (i, 0)),
        compiler_params=pltpu.CompilerParams(
            dimension_semantics=("parallel",)),
    )(x2d, w2d, b_cols)

    # ---- scatter of disjoint 3x3 patches (layout-only, fused by XLA jit) ----
    # Because bias+lrelu were fused in the kernel, untouched stride-gap pixels
    # must be filled with lrelu(bias_c) per channel, not zero.
    # TODO(synk): the patch reorder stays in XLA; an in-kernel scatter would
    # need per-row strided output indexing that BlockSpec cannot express.
    act = gemm[:M, :N_COL_RAW].reshape(N, H, W, C_OUT, KH, KW)
    padded = jnp.pad(act, ((0, 0),) * 4 + ((0, STRIDE - KH), (0, STRIDE - KW)))
    gap = (jnp.arange(STRIDE)[:, None] >= KH) | (jnp.arange(STRIDE)[None, :] >= KW)
    lrelu_b = jnp.where(bias > 0, bias, bias * NEG_SLOPE)
    padded = padded + jnp.where(gap[None, :, :], lrelu_b[:, None, None], 0.0)
    full = padded.transpose(0, 3, 1, 4, 2, 5).reshape(N, C_OUT, H * STRIDE, W * STRIDE)
    return full[:, :, PAD:PAD + H_out, PAD:PAD + W_out]


def ref_forward(x, w, b):
    # vectorized numpy reference reproducing PyTorch ConvTranspose2d + leaky relu
    N, Cin, H, W = x.shape
    H_out = (H - 1) * STRIDE - 2 * PAD + KH
    W_out = (W - 1) * STRIDE - 2 * PAD + KW
    out = np.broadcast_to(b[None, :, None, None],
                          (N, C_OUT, H_out, W_out)).astype(np.float32).copy()
    for kh in range(KH):
        for kw in range(KW):
            v = np.einsum('ncij,co->noij', x, w[:, :, kh, kw])
            oi = np.arange(H) * STRIDE - PAD + kh
            oj = np.arange(W) * STRIDE - PAD + kw
            vi = (oi >= 0) & (oi < H_out)
            vj = (oj >= 0) & (oj < W_out)
            out[:, :, oi[vi][:, None], oj[vj][None, :]] += v[:, :, vi][:, :, :, vj]
    return np.where(out > 0, out, out * NEG_SLOPE)


if __name__ == "__main__":
    key = jax.random.PRNGKey(0)
    k1, k2, k3 = jax.random.split(key, 3)

    # shapes implied by the module: x2 = torch.randn(7, 33, 20, 25)
    N, H, W = 7, 20, 25
    x = jax.random.normal(k1, (N, C_IN, H, W), jnp.float32)

    # deterministic param init (PyTorch-style uniform bound)
    bound = 1.0 / np.sqrt(C_OUT * KH * KW)
    weight = jax.random.uniform(k2, (C_IN, C_OUT, KH, KW), jnp.float32, -bound, bound)
    bias = jax.random.uniform(k3, (C_OUT,), jnp.float32, -bound, bound)

    out = conv_transpose_leaky(x, weight, bias)
    out = jax.block_until_ready(out)

    ref = ref_forward(np.asarray(x), np.asarray(weight), np.asarray(bias))
    np.testing.assert_allclose(np.asarray(out), ref, rtol=1e-4, atol=1e-4)
    print("KERNEL_OK")
</pallas_src>

<mosaic_0001>
module attributes {stable_mosaic.version = 11 : i64} {
  func.func @gemm_bias_lrelu_kernel(%arg0: i32, %arg1: memref<512x33xf32, #tpu.memory_space<vmem>>, %arg2: memref<33x256xf32, #tpu.memory_space<vmem>>, %arg3: memref<1x256xf32, #tpu.memory_space<vmem>>, %arg4: memref<512x256xf32, #tpu.memory_space<vmem>>) attributes {dimension_semantics = [#tpu.dimension_semantics<parallel>], iteration_bounds = array<i64: 7>, scalar_prefetch = 0 : i64, scratch_operands = 0 : i64, tpu.core_type = #tpu.core_type<tc>, window_params = [{transform_indices = @transform_0, window_bounds = array<i64: 512, 33>}, {pipeline_mode = #tpu.pipeline_mode<synchronous>, transform_indices = @transform_1, window_bounds = array<i64: 33, 256>}, {pipeline_mode = #tpu.pipeline_mode<synchronous>, transform_indices = @transform_2, window_bounds = array<i64: 1, 256>}, {transform_indices = @transform_3, window_bounds = array<i64: 512, 256>}]} {
    %c0 = arith.constant 0 : index
    %c0_0 = arith.constant 0 : index
    %0 = vector.load %arg1[%c0, %c0_0] : memref<512x33xf32, #tpu.memory_space<vmem>>, vector<512x33xf32>
    %c0_1 = arith.constant 0 : index
    %c0_2 = arith.constant 0 : index
    %1 = vector.load %arg2[%c0_1, %c0_2] : memref<33x256xf32, #tpu.memory_space<vmem>>, vector<33x256xf32>
    %cst = arith.constant dense<0.000000e+00> : vector<512x256xf32>
    %2 = tpu.matmul %0, %1, %cst {dimension_numbers = #tpu.dot_dimension_numbers<[1], [0], [0], [1], [0, 0, 1, 1], [], []>} : vector<512x33xf32>, vector<33x256xf32>, vector<512x256xf32> -> vector<512x256xf32>
    %c0_3 = arith.constant 0 : index
    %c0_4 = arith.constant 0 : index
    %3 = vector.load %arg3[%c0_3, %c0_4] : memref<1x256xf32, #tpu.memory_space<vmem>>, vector<1x256xf32>
    %4 = vector.broadcast %3 : vector<1x256xf32> to vector<512x256xf32>
    %5 = arith.addf %2, %4 : vector<512x256xf32>
    %cst_5 = arith.constant 0.000000e+00 : f32
    %6 = vector.broadcast %cst_5 : f32 to vector<512x256xf32>
    %7 = arith.cmpf ogt, %5, %6 : vector<512x256xf32>
    %cst_6 = arith.constant 6.250000e-02 : f32
    %8 = vector.broadcast %cst_6 : f32 to vector<512x256xf32>
    %9 = arith.mulf %5, %8 : vector<512x256xf32>
    %10 = arith.select %7, %5, %9 : vector<512x256xi1>, vector<512x256xf32>
    %c0_7 = arith.constant 0 : index
    %c0_8 = arith.constant 0 : index
    %11 = vector.load %arg4[%c0_7, %c0_8] : memref<512x256xf32, #tpu.memory_space<vmem>>, vector<512x256xf32>
    tpu.vector_store %arg4[%c0_7, %c0_8], %10 {strides = array<i32>} : memref<512x256xf32, #tpu.memory_space<vmem>>, vector<512x256xf32>,
    return
  }
  func.func @transform_0(%arg0: i32) -> (i32, i32) {
    %c0_i32 = arith.constant 0 : i32
    %c0_i32_0 = arith.constant 0 : i32
    return %arg0, %c0_i32 : i32, i32
  }
  func.func @transform_1(%arg0: i32) -> (i32, i32) {
    %c0_i32 = arith.constant 0 : i32
    %c0_i32_0 = arith.constant 0 : i32
    %c0_i32_1 = arith.constant 0 : i32
    return %c0_i32, %c0_i32_0 : i32, i32
  }
  func.func @transform_2(%arg0: i32) -> (i32, i32) {
    %c0_i32 = arith.constant 0 : i32
    %c0_i32_0 = arith.constant 0 : i32
    %c0_i32_1 = arith.constant 0 : i32
    return %c0_i32, %c0_i32_0 : i32, i32
  }
  func.func @transform_3(%arg0: i32) -> (i32, i32) {
    %c0_i32 = arith.constant 0 : i32
    %c0_i32_0 = arith.constant 0 : i32
    return %arg0, %c0_i32 : i32, i32
  }
}

</mosaic_0001>

<bundles_post_ra>
// kernel: conv_transpose_leaky.1
= control target key start
LH: loop header
LB: loop body
LE: loop exit
PB: predicated region body
PF: predicated region fallthrough
CT: control target
= control target key end

     0   :  { %s1608_s12 = smov 0   ;;  %s2118_s0 = inlined_call_operand.vmem [shape: f32[3584,33], index: 0, kind: input, shape index: {}]   ;;  %s2119_s1 = inlined_call_operand.vmem [shape: f32[33,256], index: 1, kind: input, shape index: {}]   ;;  %s2120_s2 = inlined_call_operand.vmem [shape: f32[1,256], index: 2, kind: input, shape index: {}]   ;;  %s2121_s3 = inlined_call_operand.vmem [shape: f32[3584,256], index: 3, kind: output, shape index: {}]  }
   0x1 LB: > { %s1481_s13 = sadd.s32 4294967295, %s1585_s12   ;;  %p1485_p0 = scmp.ge.s32.totalorder %s1585_s12, 1  ;;  %s1585_s12 = sphi %s1608_s12, %s13_s12  }
   0x2   : > { %p138_p1 = scmp.lt.s32.totalorder %s1585_s12, 8 }
   0x4   : > { %p139_p2 = pnand %p1485_p0, %p138_p1 }
   0x5   : > { %s1486_s22 = sshll.u32 (!%p139_p2), %s1481_s13, 6 }
   0x6   : > { %142 = sbr.rel (%p139_p2) target bundleno = 350 (0x15e), region = 32  ;;  %p164_p3 = scmp.lt.s32.totalorder (!%p139_p2), %s1486_s22, 447 }
   0xb   : > { %v249_v0 = vld [vmem:[%s2119_s1 + $0x48] sm:$0x1]  ;;  %vm455_vm0 = vcmask 1040384   ;;  %v248_v1 = vld [vmem:[%s2119_s1 + $0x40] sm:$0x1]  ;;  %v247_v2 = vld [vmem:[%s2119_s1 + $0x38] sm:$0xff] }
   0xc   : > { %1491 = vmatprep.subr.msk.mxu0 %vm455_vm0, %v249_v0  ;;  %1560 = vmatprep.subr.msk.mxu1 %vm455_vm0, %v249_v0  ;;  %v246_v3 = vld [vmem:[%s2119_s1 + $0x30] sm:$0xff]  ;;  %v245_v4 = vld [vmem:[%s2119_s1 + $0x28] sm:$0xff]  ;;  %v244_v5 = vld [vmem:[%s2119_s1 + $0x20] sm:$0xff]  ;;  %s2123_s22 = smov (!%p164_p3, %s1486_s22), 447  ;;  %vm262_vm1 = vcmask 269312   ;;  %v1587_v12 = vmov 0.0  }
   0xd   : > { %1492 = vmatpush1.msk.msra.mxu0 %vm455_vm0, %v248_v1  ;;  %1565 = vmatpush1.msk.msra.mxu1 %vm455_vm0, %v248_v1  ;;  %v243_v6 = vld [vmem:[%s2119_s1 + $0x18] sm:$0xff]  ;;  %v242_v7 = vld [vmem:[%s2119_s1 + $0x10] sm:$0xff]  ;;  %v241_v8 = vld [vmem:[%s2119_s1 + $0x8] sm:$0xff]  ;;  %s1487_s6 = sshll.u32 %s2123_s22, 3  ;;  %s1559_s15 = sshll.u32 %s2123_s22, 4 }
   0xe   : > { %486 = vmatprep.subr.mxu0 %v247_v2  ;;  %1561 = vmatprep.subr.mxu1 %v247_v2  ;;  %v240_v9 = vld [vmem:[%s2119_s1] sm:$0xff]  ;;  %s1652_s11 = scalar_lea.vmem %s2118_s0, %s1487_s6  ;;  %s1859_s18 = scalar_lea.vmem %s2121_s3, %s1559_s15 }
   0xf   : > { %487 = vmatpush1.msra.mxu0 %v246_v3  ;;  %1566 = vmatpush1.msra.mxu1 %v246_v3  ;;  %v176_v10 = vld [vmem:[%s1652_s11] sm:$0xff]  ;;  %v177_v13 = vld [vmem:[%s1652_s11 + $0x8] sm:$0xff]  ;;  %v178_v15 = vld [vmem:[%s1652_s11 + $0x10] sm:$0xff] }
  0x10   : > { %488 = vmatprep.subr.mxu0 %v245_v4  ;;  %1562 = vmatprep.subr.mxu1 %v245_v4  ;;  %v208_v11 = vld [vmem:[%s1652_s11 + $0x100] sm:$0xff]  ;;  %v209_v14 = vld [vmem:[%s1652_s11 + $0x108] sm:$0xff]  ;;  %v210_v16 = vld [vmem:[%s1652_s11 + $0x110] sm:$0xff] }
  0x11   : > { %489 = vmatpush1.msra.mxu0 %v244_v5  ;;  %1567 = vmatpush1.msra.mxu1 %v244_v5  ;;  %v179_v17 = vld [vmem:[%s1652_s11 + $0x18] sm:$0xff]  ;;  %v180_v19 = vld [vmem:[%s1652_s11 + $0x20] sm:$0xff]  ;;  %v181_v21 = vld [vmem:[%s1652_s11 + $0x28] sm:$0xff] }
  0x12   : > { %490 = vmatprep.subr.mxu0 %v243_v6  ;;  %1563 = vmatprep.subr.mxu1 %v243_v6  ;;  %v211_v18 = vld [vmem:[%s1652_s11 + $0x118] sm:$0xff]  ;;  %v212_v20 = vld [vmem:[%s1652_s11 + $0x120] sm:$0xff]  ;;  %v213_v22 = vld [vmem:[%s1652_s11 + $0x128] sm:$0xff] }
  0x13   : > { %491 = vmatpush1.msra.mxu0 %v242_v7  ;;  %1568 = vmatpush1.msra.mxu1 %v242_v7  ;;  %v182_v23 = vld [vmem:[%s1652_s11 + $0x30] sm:$0xff]  ;;  %v183_v25 = vld [vmem:[%s1652_s11 + $0x38] sm:$0xff]  ;;  %v184_v27 = vld [vmem:[%s1652_s11 + $0x40] sm:$0xff] }
  0x14   : > { %492 = vmatprep.subr.mxu0 %v241_v8  ;;  %1564 = vmatprep.subr.mxu1 %v241_v8  ;;  %v214_v24 = vld [vmem:[%s1652_s11 + $0x130] sm:$0xff]  ;;  %v215_v26 = vld [vmem:[%s1652_s11 + $0x138] sm:$0xff]  ;;  %v216_v28 = vld [vmem:[%s1652_s11 + $0x140] sm:$0xff] }
  0x15   : > { %493 = vmatpush1.msra.mxu0 %v240_v9  ;;  %1569 = vmatpush1.msra.mxu1 %v240_v9  ;;  %v185_v29 = vld [vmem:[%s1652_s11 + $0x48] sm:$0xff]  ;;  %v186_v31 = vld [vmem:[%s1652_s11 + $0x50] sm:$0xff]  ;;  %v187_v33 = vld [vmem:[%s1652_s11 + $0x58] sm:$0xff] }
  0x16   : > { %526 = vmatprep.mubr.f32.mxu0 %v1587_v12  ;;  %718 = vmatprep.mubr.f32.mxu1 %v1587_v12  ;;  %v217_v30 = vld [vmem:[%s1652_s11 + $0x148] sm:$0xff]  ;;  %v218_v32 = vld [vmem:[%s1652_s11 + $0x150] sm:$0xff]  ;;  %v219_v34 = vld [vmem:[%s1652_s11 + $0x158] sm:$0xff] }
  0x17   : > { %1493 = vmatmul.mubr.msk.f32.vlgmr.msra.gmra.mxu0 %vm262_vm1, %v176_v10  ;;  %1525 = vmatmul.mubr.msk.f32.vlgmr.msra.gmra.mxu1 %vm262_vm1, %v208_v11  ;;  %v188_v35 = vld [vmem:[%s1652_s11 + $0x60] sm:$0xff]  ;;  %v189_v37 = vld [vmem:[%s1652_s11 + $0x68] sm:$0xff]  ;;  %v190_v39 = vld [vmem:[%s1652_s11 + $0x70] sm:$0xff]  ;;  %v252_v11 = vlaneseq }
  0x18   : > { %532 = vmatprep.mubr.f32.mxu0 %v1587_v12  ;;  %724 = vmatprep.mubr.f32.mxu1 %v1587_v12  ;;  %v220_v36 = vld [vmem:[%s1652_s11 + $0x160] sm:$0xff]  ;;  %v221_v38 = vld [vmem:[%s1652_s11 + $0x168] sm:$0xff]  ;;  %v222_v40 = vld [vmem:[%s1652_s11 + $0x170] sm:$0xff] }
  0x19   : > { %v191_v41 = vld [vmem:[%s1652_s11 + $0x78] sm:$0xff]  ;;  %v192_v43 = vld [vmem:[%s1652_s11 + $0x80] sm:$0xff]  ;;  %v193_v45 = vld [vmem:[%s1652_s11 + $0x88] sm:$0xff] }
  0x1a   : > { %v223_v42 = vld [vmem:[%s1652_s11 + $0x178] sm:$0xff]  ;;  %v224_v44 = vld [vmem:[%s1652_s11 + $0x180] sm:$0xff]  ;;  %v225_v46 = vld [vmem:[%s1652_s11 + $0x188] sm:$0xff] }
  0x1b   : > { %1494 = vmatmul.mubr.msk.f32.gmra.mxu0 %vm262_vm1, %v177_v13  ;;  %1526 = vmatmul.mubr.msk.f32.gmra.mxu1 %vm262_vm1, %v209_v14  ;;  %v194_v47 = vld [vmem:[%s1652_s11 + $0x90] sm:$0xff]  ;;  %v195_v49 = vld [vmem:[%s1652_s11 + $0x98] sm:$0xff]  ;;  %v196_v51 = vld [vmem:[%s1652_s11 + $0xa0] sm:$0xff]  ;;  %v253_v13 = vshrl.u32 %v252_v11, 7 }
  0x1c   : > { %538 = vmatprep.mubr.f32.mxu0 %v1587_v12  ;;  %730 = vmatprep.mubr.f32.mxu1 %v1587_v12  ;;  %v226_v48 = vld [vmem:[%s1652_s11 + $0x190] sm:$0xff]  ;;  %v227_v50 = vld [vmem:[%s1652_s11 + $0x198] sm:$0xff]  ;;  %v228_v52 = vld [vmem:[%s1652_s11 + $0x1a0] sm:$0xff] }
  0x1d   : > { %v197_v53 = vld [vmem:[%s1652_s11 + $0xa8] sm:$0xff]  ;;  %v198_v55 = vld [vmem:[%s1652_s11 + $0xb0] sm:$0xff]  ;;  %v199_v57 = vld [vmem:[%s1652_s11 + $0xb8] sm:$0xff]  ;;  %v254_v14 = vsub.s32 0, %v253_v13 }
  0x1e   : > { %v229_v54 = vld [vmem:[%s1652_s11 + $0x1a8] sm:$0xff]  ;;  %v230_v56 = vld [vmem:[%s1652_s11 + $0x1b0] sm:$0xff]  ;;  %v231_v58 = vld [vmem:[%s1652_s11 + $0x1b8] sm:$0xff] }
  0x1f   : > { %1495 = vmatmul.mubr.msk.f32.gmra.mxu0 %vm262_vm1, %v178_v15  ;;  %1527 = vmatmul.mubr.msk.f32.gmra.mxu1 %vm262_vm1, %v210_v16  ;;  %v200_v59 = vld [vmem:[%s1652_s11 + $0xc0] sm:$0xff]  ;;  %v201_v61 = vld [vmem:[%s1652_s11 + $0xc8] sm:$0xff]  ;;  %v202_v63 = vld [vmem:[%s1652_s11 + $0xd0] sm:$0xff]  ;;  %v258_v16 = vsub.s32 1, %v253_v13 }
  0x20   : > { %544 = vmatprep.mubr.f32.mxu0 %v1587_v12  ;;  %736 = vmatprep.mubr.f32.mxu1 %v1587_v12  ;;  %v232_v60 = vld [vmem:[%s1652_s11 + $0x1c0] sm:$0xff]  ;;  %v233_v62 = vld [vmem:[%s1652_s11 + $0x1c8] sm:$0xff]  ;;  %v234_v0 = vld [vmem:[%s1652_s11 + $0x1d0] sm:$0xff] }
  0x21   : > { %v203_v1 = vld [vmem:[%s1652_s11 + $0xd8] sm:$0xff]  ;;  %v204_v3 = vld [vmem:[%s1652_s11 + $0xe0] sm:$0xff]  ;;  %v205_v5 = vld [vmem:[%s1652_s11 + $0xe8] sm:$0xff] }
  0x22   : > { %v235_v2 = vld [vmem:[%s1652_s11 + $0x1d8] sm:$0xff]  ;;  %v236_v4 = vld [vmem:[%s1652_s11 + $0x1e0] sm:$0xff]  ;;  %v237_v6 = vld [vmem:[%s1652_s11 + $0x1e8] sm:$0xff] }
  0x23   : > { %1496 = vmatmul.mubr.msk.f32.gmra.mxu0 %vm262_vm1, %v179_v17  ;;  %1528 = vmatmul.mubr.msk.f32.gmra.mxu1 %vm262_vm1, %v211_v18  ;;  %v206_v7 = vld [vmem:[%s1652_s11 + $0xf0] sm:$0xff]  ;;  %v207_v9 = vld [vmem:[%s1652_s11 + $0xf8] sm:$0xff]  ;;  %v250_v15 = vld [vmem:[%s2120_s2] sm:$0x3] }
  0x24   : > { %550 = vmatprep.mubr.f32.mxu0 %v1587_v12  ;;  %742 = vmatprep.mubr.f32.mxu1 %v1587_v12  ;;  %v238_v8 = vld [vmem:[%s1652_s11 + $0x1f0] sm:$0xff]  ;;  %v239_v10 = vld [vmem:[%s1652_s11 + $0x1f8] sm:$0xff]  ;;  %v1849_v17 = vrot.slane %v250_v15, %v254_v14 }
  0x27   : > { %1497 = vmatmul.mubr.msk.f32.gmra.mxu0 %vm262_vm1, %v180_v19  ;;  %1529 = vmatmul.mubr.msk.f32.gmra.mxu1 %vm262_vm1, %v212_v20 }
  0x28   : > { %556 = vmatprep.mubr.f32.mxu0 %v1587_v12  ;;  %748 = vmatprep.mubr.f32.mxu1 %v1587_v12 }
  0x2b   : > { %1498 = vmatmul.mubr.msk.f32.gmra.mxu0 %vm262_vm1, %v181_v21  ;;  %1530 = vmatmul.mubr.msk.f32.gmra.mxu1 %vm262_vm1, %v213_v22 }
  0x2c   : > { %562 = vmatprep.mubr.f32.mxu0 %v1587_v12  ;;  %754 = vmatprep.mubr.f32.mxu1 %v1587_v12 }
  0x2f   : > { %1499 = vmatmul.mubr.msk.f32.gmra.mxu0 %vm262_vm1, %v182_v23  ;;  %1531 = vmatmul.mubr.msk.f32.gmra.mxu1 %vm262_vm1, %v214_v24 }
  0x30   : > { %568 = vmatprep.mubr.f32.mxu0 %v1587_v12  ;;  %760 = vmatprep.mubr.f32.mxu1 %v1587_v12 }
  0x33   : > { %1500 = vmatmul.mubr.msk.f32.gmra.mxu0 %vm262_vm1, %v183_v25  ;;  %1532 = vmatmul.mubr.msk.f32.gmra.mxu1 %vm262_vm1, %v215_v26 }
  0x34   : > { %574 = vmatprep.mubr.f32.mxu0 %v1587_v12  ;;  %766 = vmatprep.mubr.f32.mxu1 %v1587_v12 }
  0x37   : > { %1501 = vmatmul.mubr.msk.f32.gmra.mxu0 %vm262_vm1, %v184_v27  ;;  %1533 = vmatmul.mubr.msk.f32.gmra.mxu1 %vm262_vm1, %v216_v28 }
  0x38   : > { %580 = vmatprep.mubr.f32.mxu0 %v1587_v12  ;;  %772 = vmatprep.mubr.f32.mxu1 %v1587_v12 }
  0x3b   : > { %1502 = vmatmul.mubr.msk.f32.gmra.mxu0 %vm262_vm1, %v185_v29  ;;  %1534 = vmatmul.mubr.msk.f32.gmra.mxu1 %vm262_vm1, %v217_v30 }
  0x3c   : > { %586 = vmatprep.mubr.f32.mxu0 %v1587_v12  ;;  %778 = vmatprep.mubr.f32.mxu1 %v1587_v12 }
  0x3f   : > { %1503 = vmatmul.mubr.msk.f32.gmra.mxu0 %vm262_vm1, %v186_v31  ;;  %1535 = vmatmul.mubr.msk.f32.gmra.mxu1 %vm262_vm1, %v218_v32 }
  0x40   : > { %592 = vmatprep.mubr.f32.mxu0 %v1587_v12  ;;  %784 = vmatprep.mubr.f32.mxu1 %v1587_v12 }
  0x43   : > { %1504 = vmatmul.mubr.msk.f32.gmra.mxu0 %vm262_vm1, %v187_v33  ;;  %1536 = vmatmul.mubr.msk.f32.gmra.mxu1 %vm262_vm1, %v219_v34 }
  0x44   : > { %598 = vmatprep.mubr.f32.mxu0 %v1587_v12  ;;  %790 = vmatprep.mubr.f32.mxu1 %v1587_v12 }
  0x47   : > { %1505 = vmatmul.mubr.msk.f32.gmra.mxu0 %vm262_vm1, %v188_v35  ;;  %1537 = vmatmul.mubr.msk.f32.gmra.mxu1 %vm262_vm1, %v220_v36 }
  0x48   : > { %604 = vmatprep.mubr.f32.mxu0 %v1587_v12  ;;  %796 = vmatprep.mubr.f32.mxu1 %v1587_v12 }
  0x4b   : > { %1506 = vmatmul.mubr.msk.f32.gmra.mxu0 %vm262_vm1, %v189_v37  ;;  %1538 = vmatmul.mubr.msk.f32.gmra.mxu1 %vm262_vm1, %v221_v38 }
  0x4c   : > { %610 = vmatprep.mubr.f32.mxu0 %v1587_v12  ;;  %802 = vmatprep.mubr.f32.mxu1 %v1587_v12 }
  0x4f   : > { %1507 = vmatmul.mubr.msk.f32.gmra.mxu0 %vm262_vm1, %v190_v39  ;;  %1539 = vmatmul.mubr.msk.f32.gmra.mxu1 %vm262_vm1, %v222_v40 }
  0x50   : > { %616 = vmatprep.mubr.f32.mxu0 %v1587_v12  ;;  %808 = vmatprep.mubr.f32.mxu1 %v1587_v12 }
  0x53   : > { %1508 = vmatmul.mubr.msk.f32.gmra.mxu0 %vm262_vm1, %v191_v41  ;;  %1540 = vmatmul.mubr.msk.f32.gmra.mxu1 %vm262_vm1, %v223_v42 }
  0x54   : > { %622 = vmatprep.mubr.f32.mxu0 %v1587_v12  ;;  %814 = vmatprep.mubr.f32.mxu1 %v1587_v12 }
  0x57   : > { %1509 = vmatmul.mubr.msk.f32.gmra.mxu0 %vm262_vm1, %v192_v43  ;;  %1541 = vmatmul.mubr.msk.f32.gmra.mxu1 %vm262_vm1, %v224_v44 }
  0x58   : > { %628 = vmatprep.mubr.f32.mxu0 %v1587_v12  ;;  %820 = vmatprep.mubr.f32.mxu1 %v1587_v12 }
  0x5b   : > { %1510 = vmatmul.mubr.msk.f32.gmra.mxu0 %vm262_vm1, %v193_v45  ;;  %1542 = vmatmul.mubr.msk.f32.gmra.mxu1 %vm262_vm1, %v225_v46 }
  0x5c   : > { %634 = vmatprep.mubr.f32.mxu0 %v1587_v12  ;;  %826 = vmatprep.mubr.f32.mxu1 %v1587_v12 }
  0x5f   : > { %1511 = vmatmul.mubr.msk.f32.gmra.mxu0 %vm262_vm1, %v194_v47  ;;  %1543 = vmatmul.mubr.msk.f32.gmra.mxu1 %vm262_vm1, %v226_v48 }
  0x60   : > { %640 = vmatprep.mubr.f32.mxu0 %v1587_v12  ;;  %832 = vmatprep.mubr.f32.mxu1 %v1587_v12 }
  0x63   : > { %1512 = vmatmul.mubr.msk.f32.gmra.mxu0 %vm262_vm1, %v195_v49  ;;  %1544 = vmatmul.mubr.msk.f32.gmra.mxu1 %vm262_vm1, %v227_v50 }
  0x64   : > { %646 = vmatprep.mubr.f32.mxu0 %v1587_v12  ;;  %838 = vmatprep.mubr.f32.mxu1 %v1587_v12 }
  0x67   : > { %1513 = vmatmul.mubr.msk.f32.gmra.mxu0 %vm262_vm1, %v196_v51  ;;  %1545 = vmatmul.mubr.msk.f32.gmra.mxu1 %vm262_vm1, %v228_v52 }
  0x68   : > { %652 = vmatprep.mubr.f32.mxu0 %v1587_v12  ;;  %844 = vmatprep.mubr.f32.mxu1 %v1587_v12 }
  0x6b   : > { %1514 = vmatmul.mubr.msk.f32.gmra.mxu0 %vm262_vm1, %v197_v53  ;;  %1546 = vmatmul.mubr.msk.f32.gmra.mxu1 %vm262_vm1, %v229_v54 }
  0x6c   : > { %658 = vmatprep.mubr.f32.mxu0 %v1587_v12  ;;  %850 = vmatprep.mubr.f32.mxu1 %v1587_v12 }
  0x6f   : > { %1515 = vmatmul.mubr.msk.f32.gmra.mxu0 %vm262_vm1, %v198_v55  ;;  %1547 = vmatmul.mubr.msk.f32.gmra.mxu1 %vm262_vm1, %v230_v56 }
  0x70   : > { %664 = vmatprep.mubr.f32.mxu0 %v1587_v12  ;;  %856 = vmatprep.mubr.f32.mxu1 %v1587_v12 }
  0x73   : > { %1516 = vmatmul.mubr.msk.f32.gmra.mxu0 %vm262_vm1, %v199_v57  ;;  %1548 = vmatmul.mubr.msk.f32.gmra.mxu1 %vm262_vm1, %v231_v58 }
  0x74   : > { %670 = vmatprep.mubr.f32.mxu0 %v1587_v12  ;;  %862 = vmatprep.mubr.f32.mxu1 %v1587_v12 }
  0x77   : > { %1517 = vmatmul.mubr.msk.f32.gmra.mxu0 %vm262_vm1, %v200_v59  ;;  %1549 = vmatmul.mubr.msk.f32.gmra.mxu1 %vm262_vm1, %v232_v60 }
  0x78   : > { %676 = vmatprep.mubr.f32.mxu0 %v1587_v12  ;;  %868 = vmatprep.mubr.f32.mxu1 %v1587_v12 }
  0x7b   : > { %1518 = vmatmul.mubr.msk.f32.gmra.mxu0 %vm262_vm1, %v201_v61  ;;  %1550 = vmatmul.mubr.msk.f32.gmra.mxu1 %vm262_vm1, %v233_v62 }
  0x7c   : > { %682 = vmatprep.mubr.f32.mxu0 %v1587_v12  ;;  %874 = vmatprep.mubr.f32.mxu1 %v1587_v12 }
  0x7f   : > { %1519 = vmatmul.mubr.msk.f32.gmra.mxu0 %vm262_vm1, %v202_v63  ;;  %1551 = vmatmul.mubr.msk.f32.gmra.mxu1 %vm262_vm1, %v234_v0 }
  0x80   : > { %688 = vmatprep.mubr.f32.mxu0 %v1587_v12  ;;  %880 = vmatprep.mubr.f32.mxu1 %v1587_v12 }
  0x83   : > { %1520 = vmatmul.mubr.msk.f32.gmra.mxu0 %vm262_vm1, %v203_v1  ;;  %1552 = vmatmul.mubr.msk.f32.gmra.mxu1 %vm262_vm1, %v235_v2 }
  0x84   : > { %694 = vmatprep.mubr.f32.mxu0 %v1587_v12  ;;  %886 = vmatprep.mubr.f32.mxu1 %v1587_v12 }
  0x87   : > { %1521 = vmatmul.mubr.msk.f32.gmra.mxu0 %vm262_vm1, %v204_v3  ;;  %1553 = vmatmul.mubr.msk.f32.gmra.mxu1 %vm262_vm1, %v236_v4 }
  0x88   : > { %700 = vmatprep.mubr.f32.mxu0 %v1587_v12  ;;  %892 = vmatprep.mubr.f32.mxu1 %v1587_v12 }
  0x8b   : > { %1522 = vmatmul.mubr.msk.f32.gmra.mxu0 %vm262_vm1, %v205_v5  ;;  %1554 = vmatmul.mubr.msk.f32.gmra.mxu1 %vm262_vm1, %v237_v6 }
  0x8c   : > { %706 = vmatprep.mubr.f32.mxu0 %v1587_v12  ;;  %898 = vmatprep.mubr.f32.mxu1 %v1587_v12 }
  0x8f   : > { %1523 = vmatmul.mubr.msk.f32.gmra.mxu0 %vm262_vm1, %v206_v7  ;;  %1555 = vmatmul.mubr.msk.f32.gmra.mxu1 %vm262_vm1, %v238_v8 }
  0x90   : > { %712 = vmatprep.mubr.f32.mxu0 %v1587_v12  ;;  %904 = vmatprep.mubr.f32.mxu1 %v1587_v12  ;;  %v1852_v12 = vrot.slane %v250_v15, %v258_v16 }
  0x93   : > { %1524 = vmatmul.mubr.msk.f32.gmra.mxu0 %vm262_vm1, %v207_v9  ;;  %1556 = vmatmul.mubr.msk.f32.gmra.mxu1 %vm262_vm1, %v239_v10 }
  0xd7   : > { %v528_v18 = vpop.f32.mrf.mxu0  ;;  %v720_v19 = vpop.f32.mrf.mxu1 }
  0xd8   : > { %v529_v20 = vadd.f32 %v528_v18, %v1849_v17  ;;  %v721_v21 = vadd.f32 %v720_v19, %v1849_v17 }
  0xd9   : > { %v530_v22 = vpop.f32.mrf.mxu0  ;;  %v722_v23 = vpop.f32.mrf.mxu1 }
  0xda   : > { %vm911_vm2 = vcmp.gt.f32.partialorder %v529_v20, 0.0  ;;  %v1039_v24 = vmul.f32 0.0625, %v529_v20  ;;  %vm975_vm3 = vcmp.gt.f32.partialorder %v721_v21, 0.0  ;;  %v1103_v25 = vmul.f32 0.0625, %v721_v21 }
  0xdb   : > { %v531_v26 = vadd.f32 %v530_v22, %v1852_v12  ;;  %v723_v27 = vadd.f32 %v722_v23, %v1852_v12  ;;  %v534_v28 = vpop.f32.mrf.mxu0  ;;  %v726_v29 = vpop.f32.mrf.mxu1 }
  0xdc   : > { %v1167_v30 = vsel %vm911_vm2, %v529_v20, %v1039_v24  ;;  %v1231_v31 = vsel %vm975_vm3, %v721_v21, %v1103_v25  ;;  %v535_v32 = vadd.f32 %v534_v28, %v1849_v17  ;;  %v727_v33 = vadd.f32 %v726_v29, %v1849_v17 }
  0xdd   : > { %1295 = vst [vmem:[%s1859_s18] sm:$0xff] %v1167_v30  ;;  %1359 = vst [vmem:[%s1859_s18 + $0x200] sm:$0xff] %v1231_v31  ;;  %vm912_vm4 = vcmp.gt.f32.partialorder %v531_v26, 0.0  ;;  %v1040_v34 = vmul.f32 0.0625, %v531_v26  ;;  %vm976_vm5 = vcmp.gt.f32.partialorder %v723_v27, 0.0  ;;  %v1104_v35 = vmul.f32 0.0625, %v723_v27  ;;  %v536_v36 = vpop.f32.mrf.mxu0  ;;  %v728_v37 = vpop.f32.mrf.mxu1 }
  0xde   : > { %vm913_vm6 = vcmp.gt.f32.partialorder %v535_v32, 0.0  ;;  %v1041_v38 = vmul.f32 0.0625, %v535_v32  ;;  %vm977_vm7 = vcmp.gt.f32.partialorder %v727_v33, 0.0  ;;  %v1105_v39 = vmul.f32 0.0625, %v727_v33 }
  0xdf   : > { %v1168_v40 = vsel %vm912_vm4, %v531_v26, %v1040_v34  ;;  %v1232_v41 = vsel %vm976_vm5, %v723_v27, %v1104_v35  ;;  %v537_v42 = vadd.f32 %v536_v36, %v1852_v12  ;;  %v729_v43 = vadd.f32 %v728_v37, %v1852_v12  ;;  %v540_v44 = vpop.f32.mrf.mxu0  ;;  %v732_v45 = vpop.f32.mrf.mxu1 }
  0xe0   : > { %1296 = vst [vmem:[%s1859_s18 + $0x8] sm:$0xff] %v1168_v40  ;;  %1360 = vst [vmem:[%s1859_s18 + $0x208] sm:$0xff] %v1232_v41  ;;  %v1169_v46 = vsel %vm913_vm6, %v535_v32, %v1041_v38  ;;  %v1233_v47 = vsel %vm977_vm7, %v727_v33, %v1105_v39  ;;  %v541_v48 = vadd.f32 %v540_v44, %v1849_v17 }
  0xe1   : > { %v733_v49 = vadd.f32 %v732_v45, %v1849_v17  ;;  %1297 = vst [vmem:[%s1859_s18 + $0x10] sm:$0xff] %v1169_v46  ;;  %1361 = vst [vmem:[%s1859_s18 + $0x210] sm:$0xff] %v1233_v47  ;;  %vm914_vm8 = vcmp.gt.f32.partialorder %v537_v42, 0.0  ;;  %v1042_v50 = vmul.f32 0.0625, %v537_v42  ;;  %vm978_vm9 = vcmp.gt.f32.partialorder %v729_v43, 0.0  ;;  %v542_v52 = vpop.f32.mrf.mxu0  ;;  %v734_v53 = vpop.f32.mrf.mxu1 }
  0xe2   : > { %v1106_v51 = vmul.f32 0.0625, %v729_v43  ;;  %vm915_vm10 = vcmp.gt.f32.partialorder %v541_v48, 0.0  ;;  %v1043_v54 = vmul.f32 0.0625, %v541_v48  ;;  %v543_v58 = vadd.f32 %v542_v52, %v1852_v12 }
  0xe3   : > { %vm979_vm11 = vcmp.gt.f32.partialorder %v733_v49, 0.0  ;;  %v1107_v55 = vmul.f32 0.0625, %v733_v49  ;;  %v1170_v56 = vsel %vm914_vm8, %v537_v42, %v1042_v50  ;;  %v735_v59 = vadd.f32 %v734_v53, %v1852_v12  ;;  %v546_v60 = vpop.f32.mrf.mxu0  ;;  %v738_v61 = vpop.f32.mrf.mxu1 }
  0xe4   : > { %v1234_v57 = vsel %vm978_vm9, %v729_v43, %v1106_v51  ;;  %1298 = vst [vmem:[%s1859_s18 + $0x18] sm:$0xff] %v1170_v56  ;;  %v1171_v62 = vsel %vm915_vm10, %v541_v48, %v1043_v54  ;;  %v547_v0 = vadd.f32 %v546_v60, %v1849_v17  ;;  %v739_v1 = vadd.f32 %v738_v61, %v1849_v17 }
  0xe5   : > { %1362 = vst [vmem:[%s1859_s18 + $0x218] sm:$0xff] %v1234_v57  ;;  %v1235_v63 = vsel %vm979_vm11, %v733_v49, %v1107_v55  ;;  %1299 = vst [vmem:[%s1859_s18 + $0x20] sm:$0xff] %v1171_v62  ;;  %vm916_vm12 = vcmp.gt.f32.partialorder %v543_v58, 0.0  ;;  %v1044_v2 = vmul.f32 0.0625, %v543_v58  ;;  %vm980_vm13 = vcmp.gt.f32.partialorder %v735_v59, 0.0  ;;  %v548_v4 = vpop.f32.mrf.mxu0  ;;  %v740_v5 = vpop.f32.mrf.mxu1 }
  0xe6   : > { %1363 = vst [vmem:[%s1859_s18 + $0x220] sm:$0xff] %v1235_v63  ;;  %v1108_v3 = vmul.f32 0.0625, %v735_v59  ;;  %vm917_vm14 = vcmp.gt.f32.partialorder %v547_v0, 0.0  ;;  %v1045_v6 = vmul.f32 0.0625, %v547_v0  ;;  %vm981_vm15 = vcmp.gt.f32.partialorder %v739_v1, 0.0 }
  0xe7   : > { %v1109_v7 = vmul.f32 0.0625, %v739_v1  ;;  %v1172_v8 = vsel %vm916_vm12, %v543_v58, %v1044_v2  ;;  %v549_v10 = vadd.f32 %v548_v4, %v1852_v12  ;;  %v741_v11 = vadd.f32 %v740_v5, %v1852_v12  ;;  %v552_v13 = vpop.f32.mrf.mxu0  ;;  %v744_v14 = vpop.f32.mrf.mxu1 }
  0xe8   : > { %v1236_v9 = vsel %vm980_vm13, %v735_v59, %v1108_v3  ;;  %1300 = vst [vmem:[%s1859_s18 + $0x28] sm:$0xff] %v1172_v8  ;;  %v1173_v15 = vsel %vm917_vm14, %v547_v0, %v1045_v6  ;;  %v553_v18 = vadd.f32 %v552_v13, %v1849_v17  ;;  %v745_v19 = vadd.f32 %v744_v14, %v1849_v17 }
  0xe9   : > { %1364 = vst [vmem:[%s1859_s18 + $0x228] sm:$0xff] %v1236_v9  ;;  %v1237_v16 = vsel %vm981_vm15, %v739_v1, %v1109_v7  ;;  %1301 = vst [vmem:[%s1859_s18 + $0x30] sm:$0xff] %v1173_v15  ;;  %vm918_vm0 = vcmp.gt.f32.partialorder %v549_v10, 0.0  ;;  %v1046_v20 = vmul.f32 0.0625, %v549_v10  ;;  %vm982_vm1 = vcmp.gt.f32.partialorder %v741_v11, 0.0  ;;  %v554_v22 = vpop.f32.mrf.mxu0  ;;  %v746_v23 = vpop.f32.mrf.mxu1 }
  0xea   : > { %1365 = vst [vmem:[%s1859_s18 + $0x230] sm:$0xff] %v1237_v16  ;;  %v1110_v21 = vmul.f32 0.0625, %v741_v11  ;;  %vm919_vm2 = vcmp.gt.f32.partialorder %v553_v18, 0.0  ;;  %v1047_v24 = vmul.f32 0.0625, %v553_v18  ;;  %vm983_vm3 = vcmp.gt.f32.partialorder %v745_v19, 0.0 }
  0xeb   : > { %v1111_v25 = vmul.f32 0.0625, %v745_v19  ;;  %v1174_v26 = vsel %vm918_vm0, %v549_v10, %v1046_v20  ;;  %v555_v28 = vadd.f32 %v554_v22, %v1852_v12  ;;  %v747_v29 = vadd.f32 %v746_v23, %v1852_v12  ;;  %v558_v30 = vpop.f32.mrf.mxu0  ;;  %v750_v31 = vpop.f32.mrf.mxu1 }
  0xec   : > { %v1238_v27 = vsel %vm982_vm1, %v741_v11, %v1110_v21  ;;  %1302 = vst [vmem:[%s1859_s18 + $0x38] sm:$0xff] %v1174_v26  ;;  %v1175_v32 = vsel %vm919_vm2, %v553_v18, %v1047_v24  ;;  %v559_v34 = vadd.f32 %v558_v30, %v1849_v17  ;;  %v751_v35 = vadd.f32 %v750_v31, %v1849_v17 }
  0xed   : > { %1366 = vst [vmem:[%s1859_s18 + $0x238] sm:$0xff] %v1238_v27  ;;  %v1239_v33 = vsel %vm983_vm3, %v745_v19, %v1111_v25  ;;  %1303 = vst [vmem:[%s1859_s18 + $0x40] sm:$0xff] %v1175_v32  ;;  %vm920_vm4 = vcmp.gt.f32.partialorder %v555_v28, 0.0  ;;  %v1048_v36 = vmul.f32 0.0625, %v555_v28  ;;  %vm984_vm5 = vcmp.gt.f32.partialorder %v747_v29, 0.0  ;;  %v560_v38 = vpop.f32.mrf.mxu0  ;;  %v752_v39 = vpop.f32.mrf.mxu1 }
  0xee   : > { %1367 = vst [vmem:[%s1859_s18 + $0x240] sm:$0xff] %v1239_v33  ;;  %v1112_v37 = vmul.f32 0.0625, %v747_v29  ;;  %vm921_vm6 = vcmp.gt.f32.partialorder %v559_v34, 0.0  ;;  %v1049_v40 = vmul.f32 0.0625, %v559_v34  ;;  %vm985_vm7 = vcmp.gt.f32.partialorder %v751_v35, 0.0 }
  0xef   : > { %v1113_v41 = vmul.f32 0.0625, %v751_v35  ;;  %v1176_v42 = vsel %vm920_vm4, %v555_v28, %v1048_v36  ;;  %v561_v44 = vadd.f32 %v560_v38, %v1852_v12  ;;  %v753_v45 = vadd.f32 %v752_v39, %v1852_v12  ;;  %v564_v46 = vpop.f32.mrf.mxu0  ;;  %v756_v47 = vpop.f32.mrf.mxu1 }
  0xf0   : > { %v1240_v43 = vsel %vm984_vm5, %v747_v29, %v1112_v37  ;;  %1304 = vst [vmem:[%s1859_s18 + $0x48] sm:$0xff] %v1176_v42  ;;  %v1177_v48 = vsel %vm921_vm6, %v559_v34, %v1049_v40  ;;  %v565_v50 = vadd.f32 %v564_v46, %v1849_v17  ;;  %v757_v51 = vadd.f32 %v756_v47, %v1849_v17 }
  0xf1   : > { %1368 = vst [vmem:[%s1859_s18 + $0x248] sm:$0xff] %v1240_v43  ;;  %v1241_v49 = vsel %vm985_vm7, %v751_v35, %v1113_v41  ;;  %1305 = vst [vmem:[%s1859_s18 + $0x50] sm:$0xff] %v1177_v48  ;;  %vm922_vm8 = vcmp.gt.f32.partialorder %v561_v44, 0.0  ;;  %v1050_v52 = vmul.f32 0.0625, %v561_v44  ;;  %vm986_vm9 = vcmp.gt.f32.partialorder %v753_v45, 0.0  ;;  %v566_v54 = vpop.f32.mrf.mxu0  ;;  %v758_v55 = vpop.f32.mrf.mxu1 }
  0xf2   : > { %1369 = vst [vmem:[%s1859_s18 + $0x250] sm:$0xff] %v1241_v49  ;;  %v1114_v53 = vmul.f32 0.0625, %v753_v45  ;;  %vm923_vm10 = vcmp.gt.f32.partialorder %v565_v50, 0.0  ;;  %v1051_v56 = vmul.f32 0.0625, %v565_v50  ;;  %vm987_vm11 = vcmp.gt.f32.partialorder %v757_v51, 0.0 }
  0xf3   : > { %v1115_v57 = vmul.f32 0.0625, %v757_v51  ;;  %v1178_v58 = vsel %vm922_vm8, %v561_v44, %v1050_v52  ;;  %v567_v60 = vadd.f32 %v566_v54, %v1852_v12  ;;  %v759_v61 = vadd.f32 %v758_v55, %v1852_v12  ;;  %v570_v62 = vpop.f32.mrf.mxu0  ;;  %v762_v63 = vpop.f32.mrf.mxu1 }
  0xf4   : > { %v1242_v59 = vsel %vm986_vm9, %v753_v45, %v1114_v53  ;;  %1306 = vst [vmem:[%s1859_s18 + $0x58] sm:$0xff] %v1178_v58  ;;  %v1179_v0 = vsel %vm923_vm10, %v565_v50, %v1051_v56  ;;  %v571_v2 = vadd.f32 %v570_v62, %v1849_v17  ;;  %v763_v3 = vadd.f32 %v762_v63, %v1849_v17 }
  0xf5   : > { %1370 = vst [vmem:[%s1859_s18 + $0x258] sm:$0xff] %v1242_v59  ;;  %v1243_v1 = vsel %vm987_vm11, %v757_v51, %v1115_v57  ;;  %1307 = vst [vmem:[%s1859_s18 + $0x60] sm:$0xff] %v1179_v0  ;;  %vm924_vm12 = vcmp.gt.f32.partialorder %v567_v60, 0.0  ;;  %v1052_v4 = vmul.f32 0.0625, %v567_v60  ;;  %vm988_vm13 = vcmp.gt.f32.partialorder %v759_v61, 0.0  ;;  %v572_v6 = vpop.f32.mrf.mxu0  ;;  %v764_v7 = vpop.f32.mrf.mxu1 }
  0xf6   : > { %1371 = vst [vmem:[%s1859_s18 + $0x260] sm:$0xff] %v1243_v1  ;;  %v1116_v5 = vmul.f32 0.0625, %v759_v61  ;;  %vm925_vm14 = vcmp.gt.f32.partialorder %v571_v2, 0.0  ;;  %v1053_v8 = vmul.f32 0.0625, %v571_v2  ;;  %vm989_vm15 = vcmp.gt.f32.partialorder %v763_v3, 0.0 }
  0xf7   : > { %v1117_v9 = vmul.f32 0.0625, %v763_v3  ;;  %v1180_v10 = vsel %vm924_vm12, %v567_v60, %v1052_v4  ;;  %v573_v13 = vadd.f32 %v572_v6, %v1852_v12  ;;  %v765_v14 = vadd.f32 %v764_v7, %v1852_v12  ;;  %v576_v15 = vpop.f32.mrf.mxu0  ;;  %v768_v16 = vpop.f32.mrf.mxu1 }
  0xf8   : > { %v1244_v11 = vsel %vm988_vm13, %v759_v61, %v1116_v5  ;;  %1308 = vst [vmem:[%s1859_s18 + $0x68] sm:$0xff] %v1180_v10  ;;  %v1181_v18 = vsel %vm925_vm14, %v571_v2, %v1053_v8  ;;  %v577_v20 = vadd.f32 %v576_v15, %v1849_v17  ;;  %v769_v21 = vadd.f32 %v768_v16, %v1849_v17 }
  0xf9   : > { %1372 = vst [vmem:[%s1859_s18 + $0x268] sm:$0xff] %v1244_v11  ;;  %v1245_v19 = vsel %vm989_vm15, %v763_v3, %v1117_v9  ;;  %1309 = vst [vmem:[%s1859_s18 + $0x70] sm:$0xff] %v1181_v18  ;;  %vm926_vm0 = vcmp.gt.f32.partialorder %v573_v13, 0.0  ;;  %v1054_v22 = vmul.f32 0.0625, %v573_v13  ;;  %vm990_vm1 = vcmp.gt.f32.partialorder %v765_v14, 0.0  ;;  %v578_v24 = vpop.f32.mrf.mxu0  ;;  %v770_v25 = vpop.f32.mrf.mxu1 }
  0xfa   : > { %1373 = vst [vmem:[%s1859_s18 + $0x270] sm:$0xff] %v1245_v19  ;;  %v1118_v23 = vmul.f32 0.0625, %v765_v14  ;;  %vm927_vm2 = vcmp.gt.f32.partialorder %v577_v20, 0.0  ;;  %v1055_v26 = vmul.f32 0.0625, %v577_v20  ;;  %vm991_vm3 = vcmp.gt.f32.partialorder %v769_v21, 0.0 }
  0xfb   : > { %v1119_v27 = vmul.f32 0.0625, %v769_v21  ;;  %v1182_v28 = vsel %vm926_vm0, %v573_v13, %v1054_v22  ;;  %v579_v30 = vadd.f32 %v578_v24, %v1852_v12  ;;  %v771_v31 = vadd.f32 %v770_v25, %v1852_v12  ;;  %v582_v32 = vpop.f32.mrf.mxu0  ;;  %v774_v33 = vpop.f32.mrf.mxu1 }
  0xfc   : > { %v1246_v29 = vsel %vm990_vm1, %v765_v14, %v1118_v23  ;;  %1310 = vst [vmem:[%s1859_s18 + $0x78] sm:$0xff] %v1182_v28  ;;  %v1183_v34 = vsel %vm927_vm2, %v577_v20, %v1055_v26  ;;  %v583_v36 = vadd.f32 %v582_v32, %v1849_v17  ;;  %v775_v37 = vadd.f32 %v774_v33, %v1849_v17 }
  0xfd   : > { %1374 = vst [vmem:[%s1859_s18 + $0x278] sm:$0xff] %v1246_v29  ;;  %v1247_v35 = vsel %vm991_vm3, %v769_v21, %v1119_v27  ;;  %1311 = vst [vmem:[%s1859_s18 + $0x80] sm:$0xff] %v1183_v34  ;;  %vm928_vm4 = vcmp.gt.f32.partialorder %v579_v30, 0.0  ;;  %v1056_v38 = vmul.f32 0.0625, %v579_v30  ;;  %vm992_vm5 = vcmp.gt.f32.partialorder %v771_v31, 0.0  ;;  %v584_v40 = vpop.f32.mrf.mxu0  ;;  %v776_v41 = vpop.f32.mrf.mxu1 }
  0xfe   : > { %1375 = vst [vmem:[%s1859_s18 + $0x280] sm:$0xff] %v1247_v35  ;;  %v1120_v39 = vmul.f32 0.0625, %v771_v31  ;;  %vm929_vm6 = vcmp.gt.f32.partialorder %v583_v36, 0.0  ;;  %v1057_v42 = vmul.f32 0.0625, %v583_v36  ;;  %vm993_vm7 = vcmp.gt.f32.partialorder %v775_v37, 0.0 }
  0xff   : > { %v1121_v43 = vmul.f32 0.0625, %v775_v37  ;;  %v1184_v44 = vsel %vm928_vm4, %v579_v30, %v1056_v38  ;;  %v585_v46 = vadd.f32 %v584_v40, %v1852_v12  ;;  %v777_v47 = vadd.f32 %v776_v41, %v1852_v12  ;;  %v588_v48 = vpop.f32.mrf.mxu0  ;;  %v780_v49 = vpop.f32.mrf.mxu1 }
 0x100   : > { %v1248_v45 = vsel %vm992_vm5, %v771_v31, %v1120_v39  ;;  %1312 = vst [vmem:[%s1859_s18 + $0x88] sm:$0xff] %v1184_v44  ;;  %v1185_v50 = vsel %vm929_vm6, %v583_v36, %v1057_v42  ;;  %v589_v52 = vadd.f32 %v588_v48, %v1849_v17  ;;  %v781_v53 = vadd.f32 %v780_v49, %v1849_v17 }
 0x101   : > { %1376 = vst [vmem:[%s1859_s18 + $0x288] sm:$0xff] %v1248_v45  ;;  %v1249_v51 = vsel %vm993_vm7, %v775_v37, %v1121_v43  ;;  %1313 = vst [vmem:[%s1859_s18 + $0x90] sm:$0xff] %v1185_v50  ;;  %vm930_vm8 = vcmp.gt.f32.partialorder %v585_v46, 0.0  ;;  %v1058_v54 = vmul.f32 0.0625, %v585_v46  ;;  %vm994_vm9 = vcmp.gt.f32.partialorder %v777_v47, 0.0  ;;  %v590_v56 = vpop.f32.mrf.mxu0  ;;  %v782_v57 = vpop.f32.mrf.mxu1 }
 0x102   : > { %1377 = vst [vmem:[%s1859_s18 + $0x290] sm:$0xff] %v1249_v51  ;;  %v1122_v55 = vmul.f32 0.0625, %v777_v47  ;;  %vm931_vm10 = vcmp.gt.f32.partialorder %v589_v52, 0.0  ;;  %v1059_v58 = vmul.f32 0.0625, %v589_v52  ;;  %vm995_vm11 = vcmp.gt.f32.partialorder %v781_v53, 0.0 }
 0x103   : > { %v1123_v59 = vmul.f32 0.0625, %v781_v53  ;;  %v1186_v60 = vsel %vm930_vm8, %v585_v46, %v1058_v54  ;;  %v591_v62 = vadd.f32 %v590_v56, %v1852_v12  ;;  %v783_v63 = vadd.f32 %v782_v57, %v1852_v12  ;;  %v594_v0 = vpop.f32.mrf.mxu0  ;;  %v786_v1 = vpop.f32.mrf.mxu1 }
 0x104   : > { %v1250_v61 = vsel %vm994_vm9, %v777_v47, %v1122_v55  ;;  %1314 = vst [vmem:[%s1859_s18 + $0x98] sm:$0xff] %v1186_v60  ;;  %v1187_v2 = vsel %vm931_vm10, %v589_v52, %v1059_v58  ;;  %v595_v4 = vadd.f32 %v594_v0, %v1849_v17  ;;  %v787_v5 = vadd.f32 %v786_v1, %v1849_v17 }
 0x105   : > { %1378 = vst [vmem:[%s1859_s18 + $0x298] sm:$0xff] %v1250_v61  ;;  %v1251_v3 = vsel %vm995_vm11, %v781_v53, %v1123_v59  ;;  %1315 = vst [vmem:[%s1859_s18 + $0xa0] sm:$0xff] %v1187_v2  ;;  %vm932_vm12 = vcmp.gt.f32.partialorder %v591_v62, 0.0  ;;  %v1060_v6 = vmul.f32 0.0625, %v591_v62  ;;  %vm996_vm13 = vcmp.gt.f32.partialorder %v783_v63, 0.0  ;;  %v596_v8 = vpop.f32.mrf.mxu0  ;;  %v788_v9 = vpop.f32.mrf.mxu1 }
 0x106   : > { %1379 = vst [vmem:[%s1859_s18 + $0x2a0] sm:$0xff] %v1251_v3  ;;  %v1124_v7 = vmul.f32 0.0625, %v783_v63  ;;  %vm933_vm14 = vcmp.gt.f32.partialorder %v595_v4, 0.0  ;;  %v1061_v10 = vmul.f32 0.0625, %v595_v4  ;;  %vm997_vm15 = vcmp.gt.f32.partialorder %v787_v5, 0.0 }
 0x107   : > { %v1125_v11 = vmul.f32 0.0625, %v787_v5  ;;  %v1188_v13 = vsel %vm932_vm12, %v591_v62, %v1060_v6  ;;  %v597_v15 = vadd.f32 %v596_v8, %v1852_v12  ;;  %v789_v16 = vadd.f32 %v788_v9, %v1852_v12  ;;  %v600_v18 = vpop.f32.mrf.mxu0  ;;  %v792_v19 = vpop.f32.mrf.mxu1 }
 0x108   : > { %v1252_v14 = vsel %vm996_vm13, %v783_v63, %v1124_v7  ;;  %1316 = vst [vmem:[%s1859_s18 + $0xa8] sm:$0xff] %v1188_v13  ;;  %v1189_v20 = vsel %vm933_vm14, %v595_v4, %v1061_v10  ;;  %v601_v22 = vadd.f32 %v600_v18, %v1849_v17  ;;  %v793_v23 = vadd.f32 %v792_v19, %v1849_v17 }
 0x109   : > { %1380 = vst [vmem:[%s1859_s18 + $0x2a8] sm:$0xff] %v1252_v14  ;;  %v1253_v21 = vsel %vm997_vm15, %v787_v5, %v1125_v11  ;;  %1317 = vst [vmem:[%s1859_s18 + $0xb0] sm:$0xff] %v1189_v20  ;;  %vm934_vm0 = vcmp.gt.f32.partialorder %v597_v15, 0.0  ;;  %v1062_v24 = vmul.f32 0.0625, %v597_v15  ;;  %vm998_vm1 = vcmp.gt.f32.partialorder %v789_v16, 0.0  ;;  %v602_v26 = vpop.f32.mrf.mxu0  ;;  %v794_v27 = vpop.f32.mrf.mxu1 }
 0x10a   : > { %1381 = vst [vmem:[%s1859_s18 + $0x2b0] sm:$0xff] %v1253_v21  ;;  %v1126_v25 = vmul.f32 0.0625, %v789_v16  ;;  %vm935_vm2 = vcmp.gt.f32.partialorder %v601_v22, 0.0  ;;  %v1063_v28 = vmul.f32 0.0625, %v601_v22  ;;  %vm999_vm3 = vcmp.gt.f32.partialorder %v793_v23, 0.0 }
 0x10b   : > { %v1127_v29 = vmul.f32 0.0625, %v793_v23  ;;  %v1190_v30 = vsel %vm934_vm0, %v597_v15, %v1062_v24  ;;  %v603_v32 = vadd.f32 %v602_v26, %v1852_v12  ;;  %v795_v33 = vadd.f32 %v794_v27, %v1852_v12  ;;  %v606_v34 = vpop.f32.mrf.mxu0  ;;  %v798_v35 = vpop.f32.mrf.mxu1 }
 0x10c   : > { %v1254_v31 = vsel %vm998_vm1, %v789_v16, %v1126_v25  ;;  %1318 = vst [vmem:[%s1859_s18 + $0xb8] sm:$0xff] %v1190_v30  ;;  %v1191_v36 = vsel %vm935_vm2, %v601_v22, %v1063_v28  ;;  %v607_v38 = vadd.f32 %v606_v34, %v1849_v17  ;;  %v799_v39 = vadd.f32 %v798_v35, %v1849_v17 }
 0x10d   : > { %1382 = vst [vmem:[%s1859_s18 + $0x2b8] sm:$0xff] %v1254_v31  ;;  %v1255_v37 = vsel %vm999_vm3, %v793_v23, %v1127_v29  ;;  %1319 = vst [vmem:[%s1859_s18 + $0xc0] sm:$0xff] %v1191_v36  ;;  %vm936_vm4 = vcmp.gt.f32.partialorder %v603_v32, 0.0  ;;  %v1064_v40 = vmul.f32 0.0625, %v603_v32  ;;  %vm1000_vm5 = vcmp.gt.f32.partialorder %v795_v33, 0.0  ;;  %v608_v42 = vpop.f32.mrf.mxu0  ;;  %v800_v43 = vpop.f32.mrf.mxu1 }
 0x10e   : > { %1383 = vst [vmem:[%s1859_s18 + $0x2c0] sm:$0xff] %v1255_v37  ;;  %v1128_v41 = vmul.f32 0.0625, %v795_v33  ;;  %vm937_vm6 = vcmp.gt.f32.partialorder %v607_v38, 0.0  ;;  %v1065_v44 = vmul.f32 0.0625, %v607_v38  ;;  %vm1001_vm7 = vcmp.gt.f32.partialorder %v799_v39, 0.0 }
 0x10f   : > { %v1129_v45 = vmul.f32 0.0625, %v799_v39  ;;  %v1192_v46 = vsel %vm936_vm4, %v603_v32, %v1064_v40  ;;  %v609_v48 = vadd.f32 %v608_v42, %v1852_v12  ;;  %v801_v49 = vadd.f32 %v800_v43, %v1852_v12  ;;  %v612_v50 = vpop.f32.mrf.mxu0  ;;  %v804_v51 = vpop.f32.mrf.mxu1 }
 0x110   : > { %v1256_v47 = vsel %vm1000_vm5, %v795_v33, %v1128_v41  ;;  %1320 = vst [vmem:[%s1859_s18 + $0xc8] sm:$0xff] %v1192_v46  ;;  %v1193_v52 = vsel %vm937_vm6, %v607_v38, %v1065_v44  ;;  %v613_v54 = vadd.f32 %v612_v50, %v1849_v17  ;;  %v805_v55 = vadd.f32 %v804_v51, %v1849_v17 }
 0x111   : > { %1384 = vst [vmem:[%s1859_s18 + $0x2c8] sm:$0xff] %v1256_v47  ;;  %v1257_v53 = vsel %vm1001_vm7, %v799_v39, %v1129_v45  ;;  %1321 = vst [vmem:[%s1859_s18 + $0xd0] sm:$0xff] %v1193_v52  ;;  %vm938_vm8 = vcmp.gt.f32.partialorder %v609_v48, 0.0  ;;  %v1066_v56 = vmul.f32 0.0625, %v609_v48  ;;  %vm1002_vm9 = vcmp.gt.f32.partialorder %v801_v49, 0.0  ;;  %v614_v58 = vpop.f32.mrf.mxu0  ;;  %v806_v59 = vpop.f32.mrf.mxu1 }
 0x112   : > { %1385 = vst [vmem:[%s1859_s18 + $0x2d0] sm:$0xff] %v1257_v53  ;;  %v1130_v57 = vmul.f32 0.0625, %v801_v49  ;;  %vm939_vm10 = vcmp.gt.f32.partialorder %v613_v54, 0.0  ;;  %v1067_v60 = vmul.f32 0.0625, %v613_v54  ;;  %vm1003_vm11 = vcmp.gt.f32.partialorder %v805_v55, 0.0 }
 0x113   : > { %v1131_v61 = vmul.f32 0.0625, %v805_v55  ;;  %v1194_v62 = vsel %vm938_vm8, %v609_v48, %v1066_v56  ;;  %v615_v0 = vadd.f32 %v614_v58, %v1852_v12  ;;  %v807_v1 = vadd.f32 %v806_v59, %v1852_v12  ;;  %v618_v2 = vpop.f32.mrf.mxu0  ;;  %v810_v3 = vpop.f32.mrf.mxu1 }
 0x114   : > { %v1258_v63 = vsel %vm1002_vm9, %v801_v49, %v1130_v57  ;;  %1322 = vst [vmem:[%s1859_s18 + $0xd8] sm:$0xff] %v1194_v62  ;;  %v1195_v4 = vsel %vm939_vm10, %v613_v54, %v1067_v60  ;;  %v619_v6 = vadd.f32 %v618_v2, %v1849_v17  ;;  %v811_v7 = vadd.f32 %v810_v3, %v1849_v17 }
 0x115   : > { %1386 = vst [vmem:[%s1859_s18 + $0x2d8] sm:$0xff] %v1258_v63  ;;  %v1259_v5 = vsel %vm1003_vm11, %v805_v55, %v1131_v61  ;;  %1323 = vst [vmem:[%s1859_s18 + $0xe0] sm:$0xff] %v1195_v4  ;;  %vm940_vm12 = vcmp.gt.f32.partialorder %v615_v0, 0.0  ;;  %v1068_v8 = vmul.f32 0.0625, %v615_v0  ;;  %vm1004_vm13 = vcmp.gt.f32.partialorder %v807_v1, 0.0  ;;  %v620_v10 = vpop.f32.mrf.mxu0  ;;  %v812_v11 = vpop.f32.mrf.mxu1 }
 0x116   : > { %1387 = vst [vmem:[%s1859_s18 + $0x2e0] sm:$0xff] %v1259_v5  ;;  %v1132_v9 = vmul.f32 0.0625, %v807_v1  ;;  %vm941_vm14 = vcmp.gt.f32.partialorder %v619_v6, 0.0  ;;  %v1069_v13 = vmul.f32 0.0625, %v619_v6  ;;  %vm1005_vm15 = vcmp.gt.f32.partialorder %v811_v7, 0.0 }
 0x117   : > { %v1133_v14 = vmul.f32 0.0625, %v811_v7  ;;  %v1196_v15 = vsel %vm940_vm12, %v615_v0, %v1068_v8  ;;  %v621_v18 = vadd.f32 %v620_v10, %v1852_v12  ;;  %v813_v19 = vadd.f32 %v812_v11, %v1852_v12  ;;  %v624_v20 = vpop.f32.mrf.mxu0  ;;  %v816_v21 = vpop.f32.mrf.mxu1 }
 0x118   : > { %v1260_v16 = vsel %vm1004_vm13, %v807_v1, %v1132_v9  ;;  %1324 = vst [vmem:[%s1859_s18 + $0xe8] sm:$0xff] %v1196_v15  ;;  %v1197_v22 = vsel %vm941_vm14, %v619_v6, %v1069_v13  ;;  %v625_v24 = vadd.f32 %v624_v20, %v1849_v17  ;;  %v817_v25 = vadd.f32 %v816_v21, %v1849_v17 }
 0x119   : > { %1388 = vst [vmem:[%s1859_s18 + $0x2e8] sm:$0xff] %v1260_v16  ;;  %v1261_v23 = vsel %vm1005_vm15, %v811_v7, %v1133_v14  ;;  %1325 = vst [vmem:[%s1859_s18 + $0xf0] sm:$0xff] %v1197_v22  ;;  %vm942_vm0 = vcmp.gt.f32.partialorder %v621_v18, 0.0  ;;  %v1070_v26 = vmul.f32 0.0625, %v621_v18  ;;  %vm1006_vm1 = vcmp.gt.f32.partialorder %v813_v19, 0.0  ;;  %v626_v28 = vpop.f32.mrf.mxu0  ;;  %v818_v29 = vpop.f32.mrf.mxu1 }
 0x11a   : > { %1389 = vst [vmem:[%s1859_s18 + $0x2f0] sm:$0xff] %v1261_v23  ;;  %v1134_v27 = vmul.f32 0.0625, %v813_v19  ;;  %vm943_vm2 = vcmp.gt.f32.partialorder %v625_v24, 0.0  ;;  %v1071_v30 = vmul.f32 0.0625, %v625_v24  ;;  %vm1007_vm3 = vcmp.gt.f32.partialorder %v817_v25, 0.0 }
 0x11b   : > { %v1135_v31 = vmul.f32 0.0625, %v817_v25  ;;  %v1198_v32 = vsel %vm942_vm0, %v621_v18, %v1070_v26  ;;  %v627_v34 = vadd.f32 %v626_v28, %v1852_v12  ;;  %v819_v35 = vadd.f32 %v818_v29, %v1852_v12  ;;  %v630_v36 = vpop.f32.mrf.mxu0  ;;  %v822_v37 = vpop.f32.mrf.mxu1 }
 0x11c   : > { %v1262_v33 = vsel %vm1006_vm1, %v813_v19, %v1134_v27  ;;  %1326 = vst [vmem:[%s1859_s18 + $0xf8] sm:$0xff] %v1198_v32  ;;  %v1199_v38 = vsel %vm943_vm2, %v625_v24, %v1071_v30  ;;  %v631_v40 = vadd.f32 %v630_v36, %v1849_v17  ;;  %v823_v41 = vadd.f32 %v822_v37, %v1849_v17 }
 0x11d   : > { %1390 = vst [vmem:[%s1859_s18 + $0x2f8] sm:$0xff] %v1262_v33  ;;  %v1263_v39 = vsel %vm1007_vm3, %v817_v25, %v1135_v31  ;;  %1327 = vst [vmem:[%s1859_s18 + $0x100] sm:$0xff] %v1199_v38  ;;  %vm944_vm4 = vcmp.gt.f32.partialorder %v627_v34, 0.0  ;;  %v1072_v42 = vmul.f32 0.0625, %v627_v34  ;;  %vm1008_vm5 = vcmp.gt.f32.partialorder %v819_v35, 0.0  ;;  %v632_v44 = vpop.f32.mrf.mxu0  ;;  %v824_v45 = vpop.f32.mrf.mxu1 }
 0x11e   : > { %1391 = vst [vmem:[%s1859_s18 + $0x300] sm:$0xff] %v1263_v39  ;;  %v1136_v43 = vmul.f32 0.0625, %v819_v35  ;;  %vm945_vm6 = vcmp.gt.f32.partialorder %v631_v40, 0.0  ;;  %v1073_v46 = vmul.f32 0.0625, %v631_v40  ;;  %vm1009_vm7 = vcmp.gt.f32.partialorder %v823_v41, 0.0 }
 0x11f   : > { %v1137_v47 = vmul.f32 0.0625, %v823_v41  ;;  %v1200_v48 = vsel %vm944_vm4, %v627_v34, %v1072_v42  ;;  %v633_v50 = vadd.f32 %v632_v44, %v1852_v12  ;;  %v825_v51 = vadd.f32 %v824_v45, %v1852_v12  ;;  %v636_v52 = vpop.f32.mrf.mxu0  ;;  %v828_v53 = vpop.f32.mrf.mxu1 }
 0x120   : > { %v1264_v49 = vsel %vm1008_vm5, %v819_v35, %v1136_v43  ;;  %1328 = vst [vmem:[%s1859_s18 + $0x108] sm:$0xff] %v1200_v48  ;;  %v1201_v54 = vsel %vm945_vm6, %v631_v40, %v1073_v46  ;;  %v637_v56 = vadd.f32 %v636_v52, %v1849_v17  ;;  %v829_v57 = vadd.f32 %v828_v53, %v1849_v17 }
 0x121   : > { %1392 = vst [vmem:[%s1859_s18 + $0x308] sm:$0xff] %v1264_v49  ;;  %v1265_v55 = vsel %vm1009_vm7, %v823_v41, %v1137_v47  ;;  %1329 = vst [vmem:[%s1859_s18 + $0x110] sm:$0xff] %v1201_v54  ;;  %vm946_vm8 = vcmp.gt.f32.partialorder %v633_v50, 0.0  ;;  %v1074_v58 = vmul.f32 0.0625, %v633_v50  ;;  %vm1010_vm9 = vcmp.gt.f32.partialorder %v825_v51, 0.0  ;;  %v638_v60 = vpop.f32.mrf.mxu0  ;;  %v830_v61 = vpop.f32.mrf.mxu1 }
 0x122   : > { %1393 = vst [vmem:[%s1859_s18 + $0x310] sm:$0xff] %v1265_v55  ;;  %v1138_v59 = vmul.f32 0.0625, %v825_v51  ;;  %vm947_vm10 = vcmp.gt.f32.partialorder %v637_v56, 0.0  ;;  %v1075_v62 = vmul.f32 0.0625, %v637_v56  ;;  %vm1011_vm11 = vcmp.gt.f32.partialorder %v829_v57, 0.0 }
 0x123   : > { %v1139_v63 = vmul.f32 0.0625, %v829_v57  ;;  %v1202_v0 = vsel %vm946_vm8, %v633_v50, %v1074_v58  ;;  %v639_v2 = vadd.f32 %v638_v60, %v1852_v12  ;;  %v831_v3 = vadd.f32 %v830_v61, %v1852_v12  ;;  %v642_v4 = vpop.f32.mrf.mxu0  ;;  %v834_v5 = vpop.f32.mrf.mxu1 }
 0x124   : > { %v1266_v1 = vsel %vm1010_vm9, %v825_v51, %v1138_v59  ;;  %1330 = vst [vmem:[%s1859_s18 + $0x118] sm:$0xff] %v1202_v0  ;;  %v1203_v6 = vsel %vm947_vm10, %v637_v56, %v1075_v62  ;;  %v643_v8 = vadd.f32 %v642_v4, %v1849_v17  ;;  %v835_v9 = vadd.f32 %v834_v5, %v1849_v17 }
 0x125   : > { %1394 = vst [vmem:[%s1859_s18 + $0x318] sm:$0xff] %v1266_v1  ;;  %v1267_v7 = vsel %vm1011_vm11, %v829_v57, %v1139_v63  ;;  %1331 = vst [vmem:[%s1859_s18 + $0x120] sm:$0xff] %v1203_v6  ;;  %vm948_vm12 = vcmp.gt.f32.partialorder %v639_v2, 0.0  ;;  %v1076_v10 = vmul.f32 0.0625, %v639_v2  ;;  %vm1012_vm13 = vcmp.gt.f32.partialorder %v831_v3, 0.0  ;;  %v644_v13 = vpop.f32.mrf.mxu0  ;;  %v836_v14 = vpop.f32.mrf.mxu1 }
 0x126   : > { %1395 = vst [vmem:[%s1859_s18 + $0x320] sm:$0xff] %v1267_v7  ;;  %v1140_v11 = vmul.f32 0.0625, %v831_v3  ;;  %vm949_vm14 = vcmp.gt.f32.partialorder %v643_v8, 0.0  ;;  %v1077_v15 = vmul.f32 0.0625, %v643_v8  ;;  %vm1013_vm15 = vcmp.gt.f32.partialorder %v835_v9, 0.0 }
 0x127   : > { %v1141_v16 = vmul.f32 0.0625, %v835_v9  ;;  %v1204_v18 = vsel %vm948_vm12, %v639_v2, %v1076_v10  ;;  %v645_v20 = vadd.f32 %v644_v13, %v1852_v12  ;;  %v837_v21 = vadd.f32 %v836_v14, %v1852_v12  ;;  %v648_v22 = vpop.f32.mrf.mxu0  ;;  %v840_v23 = vpop.f32.mrf.mxu1 }
 0x128   : > { %v1268_v19 = vsel %vm1012_vm13, %v831_v3, %v1140_v11  ;;  %1332 = vst [vmem:[%s1859_s18 + $0x128] sm:$0xff] %v1204_v18  ;;  %v1205_v24 = vsel %vm949_vm14, %v643_v8, %v1077_v15  ;;  %v649_v26 = vadd.f32 %v648_v22, %v1849_v17  ;;  %v841_v27 = vadd.f32 %v840_v23, %v1849_v17 }
 0x129   : > { %1396 = vst [vmem:[%s1859_s18 + $0x328] sm:$0xff] %v1268_v19  ;;  %v1269_v25 = vsel %vm1013_vm15, %v835_v9, %v1141_v16  ;;  %1333 = vst [vmem:[%s1859_s18 + $0x130] sm:$0xff] %v1205_v24  ;;  %vm950_vm0 = vcmp.gt.f32.partialorder %v645_v20, 0.0  ;;  %v1078_v28 = vmul.f32 0.0625, %v645_v20  ;;  %vm1014_vm1 = vcmp.gt.f32.partialorder %v837_v21, 0.0  ;;  %v650_v30 = vpop.f32.mrf.mxu0  ;;  %v842_v31 = vpop.f32.mrf.mxu1 }
 0x12a   : > { %1397 = vst [vmem:[%s1859_s18 + $0x330] sm:$0xff] %v1269_v25  ;;  %v1142_v29 = vmul.f32 0.0625, %v837_v21  ;;  %vm951_vm2 = vcmp.gt.f32.partialorder %v649_v26, 0.0  ;;  %v1079_v32 = vmul.f32 0.0625, %v649_v26  ;;  %vm1015_vm3 = vcmp.gt.f32.partialorder %v841_v27, 0.0 }
 0x12b   : > { %v1143_v33 = vmul.f32 0.0625, %v841_v27  ;;  %v1206_v34 = vsel %vm950_vm0, %v645_v20, %v1078_v28  ;;  %v651_v36 = vadd.f32 %v650_v30, %v1852_v12  ;;  %v843_v37 = vadd.f32 %v842_v31, %v1852_v12  ;;  %v654_v38 = vpop.f32.mrf.mxu0  ;;  %v846_v39 = vpop.f32.mrf.mxu1 }
 0x12c   : > { %v1270_v35 = vsel %vm1014_vm1, %v837_v21, %v1142_v29  ;;  %1334 = vst [vmem:[%s1859_s18 + $0x138] sm:$0xff] %v1206_v34  ;;  %v1207_v40 = vsel %vm951_vm2, %v649_v26, %v1079_v32  ;;  %v655_v42 = vadd.f32 %v654_v38, %v1849_v17  ;;  %v847_v43 = vadd.f32 %v846_v39, %v1849_v17 }
 0x12d   : > { %1398 = vst [vmem:[%s1859_s18 + $0x338] sm:$0xff] %v1270_v35  ;;  %v1271_v41 = vsel %vm1015_vm3, %v841_v27, %v1143_v33  ;;  %1335 = vst [vmem:[%s1859_s18 + $0x140] sm:$0xff] %v1207_v40  ;;  %vm952_vm4 = vcmp.gt.f32.partialorder %v651_v36, 0.0  ;;  %v1080_v44 = vmul.f32 0.0625, %v651_v36  ;;  %vm1016_vm5 = vcmp.gt.f32.partialorder %v843_v37, 0.0  ;;  %v656_v46 = vpop.f32.mrf.mxu0  ;;  %v848_v47 = vpop.f32.mrf.mxu1 }
 0x12e   : > { %1399 = vst [vmem:[%s1859_s18 + $0x340] sm:$0xff] %v1271_v41  ;;  %v1144_v45 = vmul.f32 0.0625, %v843_v37  ;;  %vm953_vm6 = vcmp.gt.f32.partialorder %v655_v42, 0.0  ;;  %v1081_v48 = vmul.f32 0.0625, %v655_v42  ;;  %vm1017_vm7 = vcmp.gt.f32.partialorder %v847_v43, 0.0 }
 0x12f   : > { %v1145_v49 = vmul.f32 0.0625, %v847_v43  ;;  %v1208_v50 = vsel %vm952_vm4, %v651_v36, %v1080_v44  ;;  %v657_v52 = vadd.f32 %v656_v46, %v1852_v12  ;;  %v849_v53 = vadd.f32 %v848_v47, %v1852_v12  ;;  %v660_v54 = vpop.f32.mrf.mxu0  ;;  %v852_v55 = vpop.f32.mrf.mxu1 }
 0x130   : > { %v1272_v51 = vsel %vm1016_vm5, %v843_v37, %v1144_v45  ;;  %1336 = vst [vmem:[%s1859_s18 + $0x148] sm:$0xff] %v1208_v50  ;;  %v1209_v56 = vsel %vm953_vm6, %v655_v42, %v1081_v48  ;;  %v661_v58 = vadd.f32 %v660_v54, %v1849_v17  ;;  %v853_v59 = vadd.f32 %v852_v55, %v1849_v17 }
 0x131   : > { %1400 = vst [vmem:[%s1859_s18 + $0x348] sm:$0xff] %v1272_v51  ;;  %v1273_v57 = vsel %vm1017_vm7, %v847_v43, %v1145_v49  ;;  %1337 = vst [vmem:[%s1859_s18 + $0x150] sm:$0xff] %v1209_v56  ;;  %vm954_vm8 = vcmp.gt.f32.partialorder %v657_v52, 0.0  ;;  %v1082_v60 = vmul.f32 0.0625, %v657_v52  ;;  %vm1018_vm9 = vcmp.gt.f32.partialorder %v849_v53, 0.0  ;;  %v662_v62 = vpop.f32.mrf.mxu0  ;;  %v854_v63 = vpop.f32.mrf.mxu1 }
 0x132   : > { %1401 = vst [vmem:[%s1859_s18 + $0x350] sm:$0xff] %v1273_v57  ;;  %v1146_v61 = vmul.f32 0.0625, %v849_v53  ;;  %vm955_vm10 = vcmp.gt.f32.partialorder %v661_v58, 0.0  ;;  %v1083_v0 = vmul.f32 0.0625, %v661_v58  ;;  %vm1019_vm11 = vcmp.gt.f32.partialorder %v853_v59, 0.0 }
 0x133   : > { %v1147_v1 = vmul.f32 0.0625, %v853_v59  ;;  %v1210_v2 = vsel %vm954_vm8, %v657_v52, %v1082_v60  ;;  %v663_v4 = vadd.f32 %v662_v62, %v1852_v12  ;;  %v855_v5 = vadd.f32 %v854_v63, %v1852_v12  ;;  %v666_v6 = vpop.f32.mrf.mxu0  ;;  %v858_v7 = vpop.f32.mrf.mxu1 }
 0x134   : > { %v1274_v3 = vsel %vm1018_vm9, %v849_v53, %v1146_v61  ;;  %1338 = vst [vmem:[%s1859_s18 + $0x158] sm:$0xff] %v1210_v2  ;;  %v1211_v8 = vsel %vm955_vm10, %v661_v58, %v1083_v0  ;;  %v667_v10 = vadd.f32 %v666_v6, %v1849_v17  ;;  %v859_v11 = vadd.f32 %v858_v7, %v1849_v17 }
 0x135   : > { %1402 = vst [vmem:[%s1859_s18 + $0x358] sm:$0xff] %v1274_v3  ;;  %v1275_v9 = vsel %vm1019_vm11, %v853_v59, %v1147_v1  ;;  %1339 = vst [vmem:[%s1859_s18 + $0x160] sm:$0xff] %v1211_v8  ;;  %vm956_vm12 = vcmp.gt.f32.partialorder %v663_v4, 0.0  ;;  %v1084_v13 = vmul.f32 0.0625, %v663_v4  ;;  %vm1020_vm13 = vcmp.gt.f32.partialorder %v855_v5, 0.0  ;;  %v668_v15 = vpop.f32.mrf.mxu0  ;;  %v860_v16 = vpop.f32.mrf.mxu1 }
 0x136   : > { %1403 = vst [vmem:[%s1859_s18 + $0x360] sm:$0xff] %v1275_v9  ;;  %v1148_v14 = vmul.f32 0.0625, %v855_v5  ;;  %vm957_vm14 = vcmp.gt.f32.partialorder %v667_v10, 0.0  ;;  %v1085_v18 = vmul.f32 0.0625, %v667_v10  ;;  %vm1021_vm15 = vcmp.gt.f32.partialorder %v859_v11, 0.0 }
 0x137   : > { %v1149_v19 = vmul.f32 0.0625, %v859_v11  ;;  %v1212_v20 = vsel %vm956_vm12, %v663_v4, %v1084_v13  ;;  %v669_v22 = vadd.f32 %v668_v15, %v1852_v12  ;;  %v861_v23 = vadd.f32 %v860_v16, %v1852_v12  ;;  %v672_v24 = vpop.f32.mrf.mxu0  ;;  %v864_v25 = vpop.f32.mrf.mxu1 }
 0x138   : > { %v1276_v21 = vsel %vm1020_vm13, %v855_v5, %v1148_v14  ;;  %1340 = vst [vmem:[%s1859_s18 + $0x168] sm:$0xff] %v1212_v20  ;;  %v1213_v26 = vsel %vm957_vm14, %v667_v10, %v1085_v18  ;;  %v673_v28 = vadd.f32 %v672_v24, %v1849_v17  ;;  %v865_v29 = vadd.f32 %v864_v25, %v1849_v17 }
 0x139   : > { %1404 = vst [vmem:[%s1859_s18 + $0x368] sm:$0xff] %v1276_v21  ;;  %v1277_v27 = vsel %vm1021_vm15, %v859_v11, %v1149_v19  ;;  %1341 = vst [vmem:[%s1859_s18 + $0x170] sm:$0xff] %v1213_v26  ;;  %vm958_vm0 = vcmp.gt.f32.partialorder %v669_v22, 0.0  ;;  %v1086_v30 = vmul.f32 0.0625, %v669_v22  ;;  %vm1022_vm1 = vcmp.gt.f32.partialorder %v861_v23, 0.0  ;;  %v674_v32 = vpop.f32.mrf.mxu0  ;;  %v866_v33 = vpop.f32.mrf.mxu1 }
 0x13a   : > { %1405 = vst [vmem:[%s1859_s18 + $0x370] sm:$0xff] %v1277_v27  ;;  %v1150_v31 = vmul.f32 0.0625, %v861_v23  ;;  %vm959_vm2 = vcmp.gt.f32.partialorder %v673_v28, 0.0  ;;  %v1087_v34 = vmul.f32 0.0625, %v673_v28  ;;  %vm1023_vm3 = vcmp.gt.f32.partialorder %v865_v29, 0.0 }
 0x13b   : > { %v1151_v35 = vmul.f32 0.0625, %v865_v29  ;;  %v1214_v36 = vsel %vm958_vm0, %v669_v22, %v1086_v30  ;;  %v675_v38 = vadd.f32 %v674_v32, %v1852_v12  ;;  %v867_v39 = vadd.f32 %v866_v33, %v1852_v12  ;;  %v678_v40 = vpop.f32.mrf.mxu0  ;;  %v870_v41 = vpop.f32.mrf.mxu1 }
 0x13c   : > { %v1278_v37 = vsel %vm1022_vm1, %v861_v23, %v1150_v31  ;;  %1342 = vst [vmem:[%s1859_s18 + $0x178] sm:$0xff] %v1214_v36  ;;  %v1215_v42 = vsel %vm959_vm2, %v673_v28, %v1087_v34  ;;  %v679_v44 = vadd.f32 %v678_v40, %v1849_v17  ;;  %v871_v45 = vadd.f32 %v870_v41, %v1849_v17 }
 0x13d   : > { %1406 = vst [vmem:[%s1859_s18 + $0x378] sm:$0xff] %v1278_v37  ;;  %v1279_v43 = vsel %vm1023_vm3, %v865_v29, %v1151_v35  ;;  %1343 = vst [vmem:[%s1859_s18 + $0x180] sm:$0xff] %v1215_v42  ;;  %vm960_vm4 = vcmp.gt.f32.partialorder %v675_v38, 0.0  ;;  %v1088_v46 = vmul.f32 0.0625, %v675_v38  ;;  %vm1024_vm5 = vcmp.gt.f32.partialorder %v867_v39, 0.0  ;;  %v680_v48 = vpop.f32.mrf.mxu0  ;;  %v872_v49 = vpop.f32.mrf.mxu1 }
 0x13e   : > { %1407 = vst [vmem:[%s1859_s18 + $0x380] sm:$0xff] %v1279_v43  ;;  %v1152_v47 = vmul.f32 0.0625, %v867_v39  ;;  %vm961_vm6 = vcmp.gt.f32.partialorder %v679_v44, 0.0  ;;  %v1089_v50 = vmul.f32 0.0625, %v679_v44  ;;  %vm1025_vm7 = vcmp.gt.f32.partialorder %v871_v45, 0.0 }
 0x13f   : > { %v1153_v51 = vmul.f32 0.0625, %v871_v45  ;;  %v1216_v52 = vsel %vm960_vm4, %v675_v38, %v1088_v46  ;;  %v681_v54 = vadd.f32 %v680_v48, %v1852_v12  ;;  %v873_v55 = vadd.f32 %v872_v49, %v1852_v12  ;;  %v684_v56 = vpop.f32.mrf.mxu0  ;;  %v876_v57 = vpop.f32.mrf.mxu1 }
 0x140   : > { %v1280_v53 = vsel %vm1024_vm5, %v867_v39, %v1152_v47  ;;  %1344 = vst [vmem:[%s1859_s18 + $0x188] sm:$0xff] %v1216_v52  ;;  %v1217_v58 = vsel %vm961_vm6, %v679_v44, %v1089_v50  ;;  %v685_v60 = vadd.f32 %v684_v56, %v1849_v17  ;;  %v877_v61 = vadd.f32 %v876_v57, %v1849_v17 }
 0x141   : > { %1408 = vst [vmem:[%s1859_s18 + $0x388] sm:$0xff] %v1280_v53  ;;  %v1281_v59 = vsel %vm1025_vm7, %v871_v45, %v1153_v51  ;;  %1345 = vst [vmem:[%s1859_s18 + $0x190] sm:$0xff] %v1217_v58  ;;  %vm962_vm8 = vcmp.gt.f32.partialorder %v681_v54, 0.0  ;;  %v1090_v62 = vmul.f32 0.0625, %v681_v54  ;;  %vm1026_vm9 = vcmp.gt.f32.partialorder %v873_v55, 0.0  ;;  %v686_v0 = vpop.f32.mrf.mxu0  ;;  %v878_v1 = vpop.f32.mrf.mxu1 }
 0x142   : > { %1409 = vst [vmem:[%s1859_s18 + $0x390] sm:$0xff] %v1281_v59  ;;  %v1154_v63 = vmul.f32 0.0625, %v873_v55  ;;  %vm963_vm10 = vcmp.gt.f32.partialorder %v685_v60, 0.0  ;;  %v1091_v2 = vmul.f32 0.0625, %v685_v60  ;;  %vm1027_vm11 = vcmp.gt.f32.partialorder %v877_v61, 0.0 }
 0x143   : > { %v1155_v3 = vmul.f32 0.0625, %v877_v61  ;;  %v1218_v4 = vsel %vm962_vm8, %v681_v54, %v1090_v62  ;;  %v687_v6 = vadd.f32 %v686_v0, %v1852_v12  ;;  %v879_v7 = vadd.f32 %v878_v1, %v1852_v12  ;;  %v690_v8 = vpop.f32.mrf.mxu0  ;;  %v882_v9 = vpop.f32.mrf.mxu1 }
 0x144   : > { %v1282_v5 = vsel %vm1026_vm9, %v873_v55, %v1154_v63  ;;  %1346 = vst [vmem:[%s1859_s18 + $0x198] sm:$0xff] %v1218_v4  ;;  %v1219_v10 = vsel %vm963_vm10, %v685_v60, %v1091_v2  ;;  %v691_v13 = vadd.f32 %v690_v8, %v1849_v17  ;;  %v883_v14 = vadd.f32 %v882_v9, %v1849_v17 }
 0x145   : > { %1410 = vst [vmem:[%s1859_s18 + $0x398] sm:$0xff] %v1282_v5  ;;  %v1283_v11 = vsel %vm1027_vm11, %v877_v61, %v1155_v3  ;;  %1347 = vst [vmem:[%s1859_s18 + $0x1a0] sm:$0xff] %v1219_v10  ;;  %vm964_vm12 = vcmp.gt.f32.partialorder %v687_v6, 0.0  ;;  %v1092_v15 = vmul.f32 0.0625, %v687_v6  ;;  %vm1028_vm13 = vcmp.gt.f32.partialorder %v879_v7, 0.0  ;;  %v692_v18 = vpop.f32.mrf.mxu0  ;;  %v884_v19 = vpop.f32.mrf.mxu1 }
 0x146   : > { %1411 = vst [vmem:[%s1859_s18 + $0x3a0] sm:$0xff] %v1283_v11  ;;  %v1156_v16 = vmul.f32 0.0625, %v879_v7  ;;  %vm965_vm14 = vcmp.gt.f32.partialorder %v691_v13, 0.0  ;;  %v1093_v20 = vmul.f32 0.0625, %v691_v13  ;;  %vm1029_vm15 = vcmp.gt.f32.partialorder %v883_v14, 0.0 }
 0x147   : > { %v1157_v21 = vmul.f32 0.0625, %v883_v14  ;;  %v1220_v22 = vsel %vm964_vm12, %v687_v6, %v1092_v15  ;;  %v693_v24 = vadd.f32 %v692_v18, %v1852_v12  ;;  %v885_v25 = vadd.f32 %v884_v19, %v1852_v12  ;;  %v696_v26 = vpop.f32.mrf.mxu0  ;;  %v888_v27 = vpop.f32.mrf.mxu1 }
 0x148   : > { %v1284_v23 = vsel %vm1028_vm13, %v879_v7, %v1156_v16  ;;  %1348 = vst [vmem:[%s1859_s18 + $0x1a8] sm:$0xff] %v1220_v22  ;;  %v1221_v28 = vsel %vm965_vm14, %v691_v13, %v1093_v20  ;;  %v697_v30 = vadd.f32 %v696_v26, %v1849_v17  ;;  %v889_v31 = vadd.f32 %v888_v27, %v1849_v17 }
 0x149   : > { %1412 = vst [vmem:[%s1859_s18 + $0x3a8] sm:$0xff] %v1284_v23  ;;  %v1285_v29 = vsel %vm1029_vm15, %v883_v14, %v1157_v21  ;;  %1349 = vst [vmem:[%s1859_s18 + $0x1b0] sm:$0xff] %v1221_v28  ;;  %vm966_vm0 = vcmp.gt.f32.partialorder %v693_v24, 0.0  ;;  %v1094_v32 = vmul.f32 0.0625, %v693_v24  ;;  %vm1030_vm1 = vcmp.gt.f32.partialorder %v885_v25, 0.0  ;;  %v698_v34 = vpop.f32.mrf.mxu0  ;;  %v890_v35 = vpop.f32.mrf.mxu1 }
 0x14a   : > { %1413 = vst [vmem:[%s1859_s18 + $0x3b0] sm:$0xff] %v1285_v29  ;;  %v1158_v33 = vmul.f32 0.0625, %v885_v25  ;;  %vm967_vm2 = vcmp.gt.f32.partialorder %v697_v30, 0.0  ;;  %v1095_v36 = vmul.f32 0.0625, %v697_v30  ;;  %vm1031_vm3 = vcmp.gt.f32.partialorder %v889_v31, 0.0 }
 0x14b   : > { %v1159_v37 = vmul.f32 0.0625, %v889_v31  ;;  %v1222_v38 = vsel %vm966_vm0, %v693_v24, %v1094_v32  ;;  %v699_v40 = vadd.f32 %v698_v34, %v1852_v12  ;;  %v891_v41 = vadd.f32 %v890_v35, %v1852_v12  ;;  %v702_v42 = vpop.f32.mrf.mxu0  ;;  %v894_v43 = vpop.f32.mrf.mxu1 }
 0x14c   : > { %v1286_v39 = vsel %vm1030_vm1, %v885_v25, %v1158_v33  ;;  %1350 = vst [vmem:[%s1859_s18 + $0x1b8] sm:$0xff] %v1222_v38  ;;  %v1223_v44 = vsel %vm967_vm2, %v697_v30, %v1095_v36  ;;  %v703_v46 = vadd.f32 %v702_v42, %v1849_v17  ;;  %v895_v47 = vadd.f32 %v894_v43, %v1849_v17 }
 0x14d   : > { %1414 = vst [vmem:[%s1859_s18 + $0x3b8] sm:$0xff] %v1286_v39  ;;  %v1287_v45 = vsel %vm1031_vm3, %v889_v31, %v1159_v37  ;;  %1351 = vst [vmem:[%s1859_s18 + $0x1c0] sm:$0xff] %v1223_v44  ;;  %vm968_vm4 = vcmp.gt.f32.partialorder %v699_v40, 0.0  ;;  %v1096_v48 = vmul.f32 0.0625, %v699_v40  ;;  %vm1032_vm5 = vcmp.gt.f32.partialorder %v891_v41, 0.0  ;;  %v704_v50 = vpop.f32.mrf.mxu0  ;;  %v896_v51 = vpop.f32.mrf.mxu1 }
 0x14e   : > { %1415 = vst [vmem:[%s1859_s18 + $0x3c0] sm:$0xff] %v1287_v45  ;;  %v1160_v49 = vmul.f32 0.0625, %v891_v41  ;;  %vm969_vm6 = vcmp.gt.f32.partialorder %v703_v46, 0.0  ;;  %v1097_v52 = vmul.f32 0.0625, %v703_v46  ;;  %vm1033_vm7 = vcmp.gt.f32.partialorder %v895_v47, 0.0 }
 0x14f   : > { %v1161_v53 = vmul.f32 0.0625, %v895_v47  ;;  %v1224_v54 = vsel %vm968_vm4, %v699_v40, %v1096_v48  ;;  %v705_v56 = vadd.f32 %v704_v50, %v1852_v12  ;;  %v897_v57 = vadd.f32 %v896_v51, %v1852_v12  ;;  %v708_v58 = vpop.f32.mrf.mxu0  ;;  %v900_v59 = vpop.f32.mrf.mxu1 }
 0x150   : > { %v1288_v55 = vsel %vm1032_vm5, %v891_v41, %v1160_v49  ;;  %1352 = vst [vmem:[%s1859_s18 + $0x1c8] sm:$0xff] %v1224_v54  ;;  %v1225_v60 = vsel %vm969_vm6, %v703_v46, %v1097_v52  ;;  %v709_v62 = vadd.f32 %v708_v58, %v1849_v17  ;;  %v901_v63 = vadd.f32 %v900_v59, %v1849_v17 }
 0x151   : > { %1416 = vst [vmem:[%s1859_s18 + $0x3c8] sm:$0xff] %v1288_v55  ;;  %v1289_v61 = vsel %vm1033_vm7, %v895_v47, %v1161_v53  ;;  %1353 = vst [vmem:[%s1859_s18 + $0x1d0] sm:$0xff] %v1225_v60  ;;  %vm970_vm8 = vcmp.gt.f32.partialorder %v705_v56, 0.0  ;;  %v1098_v0 = vmul.f32 0.0625, %v705_v56  ;;  %vm1034_vm9 = vcmp.gt.f32.partialorder %v897_v57, 0.0  ;;  %v710_v2 = vpop.f32.mrf.mxu0  ;;  %v902_v3 = vpop.f32.mrf.mxu1 }
 0x152   : > { %1417 = vst [vmem:[%s1859_s18 + $0x3d0] sm:$0xff] %v1289_v61  ;;  %v1162_v1 = vmul.f32 0.0625, %v897_v57  ;;  %vm971_vm10 = vcmp.gt.f32.partialorder %v709_v62, 0.0  ;;  %v1099_v4 = vmul.f32 0.0625, %v709_v62  ;;  %vm1035_vm11 = vcmp.gt.f32.partialorder %v901_v63, 0.0 }
 0x153   : > { %v1163_v5 = vmul.f32 0.0625, %v901_v63  ;;  %v1226_v6 = vsel %vm970_vm8, %v705_v56, %v1098_v0  ;;  %v711_v8 = vadd.f32 %v710_v2, %v1852_v12  ;;  %v903_v9 = vadd.f32 %v902_v3, %v1852_v12  ;;  %v714_v10 = vpop.f32.mrf.mxu0  ;;  %v906_v11 = vpop.f32.mrf.mxu1 }
 0x154   : > { %v1290_v7 = vsel %vm1034_vm9, %v897_v57, %v1162_v1  ;;  %1354 = vst [vmem:[%s1859_s18 + $0x1d8] sm:$0xff] %v1226_v6  ;;  %v1227_v13 = vsel %vm971_vm10, %v709_v62, %v1099_v4  ;;  %v715_v15 = vadd.f32 %v714_v10, %v1849_v17  ;;  %v907_v16 = vadd.f32 %v906_v11, %v1849_v17 }
 0x155   : > { %1418 = vst [vmem:[%s1859_s18 + $0x3d8] sm:$0xff] %v1290_v7  ;;  %v1291_v14 = vsel %vm1035_vm11, %v901_v63, %v1163_v5  ;;  %1355 = vst [vmem:[%s1859_s18 + $0x1e0] sm:$0xff] %v1227_v13  ;;  %vm972_vm12 = vcmp.gt.f32.partialorder %v711_v8, 0.0  ;;  %v1100_v18 = vmul.f32 0.0625, %v711_v8  ;;  %vm1036_vm13 = vcmp.gt.f32.partialorder %v903_v9, 0.0  ;;  %v716_v20 = vpop.f32.mrf.mxu0  ;;  %v908_v21 = vpop.f32.mrf.mxu1 }
 0x156   : > { %1419 = vst [vmem:[%s1859_s18 + $0x3e0] sm:$0xff] %v1291_v14  ;;  %v1164_v19 = vmul.f32 0.0625, %v903_v9  ;;  %vm973_vm14 = vcmp.gt.f32.partialorder %v715_v15, 0.0  ;;  %v1101_v22 = vmul.f32 0.0625, %v715_v15  ;;  %vm1037_vm15 = vcmp.gt.f32.partialorder %v907_v16, 0.0 }
 0x157   : > { %v1165_v23 = vmul.f32 0.0625, %v907_v16  ;;  %v1228_v24 = vsel %vm972_vm12, %v711_v8, %v1100_v18  ;;  %v717_v17 = vadd.f32 %v716_v20, %v1852_v12  ;;  %v909_v26 = vadd.f32 %v908_v21, %v1852_v12 }
 0x158   : > { %v1292_v25 = vsel %vm1036_vm13, %v903_v9, %v1164_v19  ;;  %1356 = vst [vmem:[%s1859_s18 + $0x1e8] sm:$0xff] %v1228_v24  ;;  %v1229_v27 = vsel %vm973_vm14, %v715_v15, %v1101_v22 }
 0x159   : > { %1420 = vst [vmem:[%s1859_s18 + $0x3e8] sm:$0xff] %v1292_v25  ;;  %v1293_v28 = vsel %vm1037_vm15, %v907_v16, %v1165_v23  ;;  %1357 = vst [vmem:[%s1859_s18 + $0x1f0] sm:$0xff] %v1229_v27  ;;  %vm974_vm0 = vcmp.gt.f32.partialorder %v717_v17, 0.0  ;;  %v1102_v29 = vmul.f32 0.0625, %v717_v17  ;;  %vm1038_vm1 = vcmp.gt.f32.partialorder %v909_v26, 0.0 }
 0x15a   : > { %1421 = vst [vmem:[%s1859_s18 + $0x3f0] sm:$0xff] %v1293_v28  ;;  %v1166_v30 = vmul.f32 0.0625, %v909_v26 }
 0x15b   : > { %v1230_v31 = vsel %vm974_vm0, %v717_v17, %v1102_v29 }
 0x15c   : > { %v1294_v32 = vsel %vm1038_vm1, %v909_v26, %v1166_v30  ;;  %1358 = vst [vmem:[%s1859_s18 + $0x1f8] sm:$0xff] %v1230_v31 }
 0x15d   : > { %1422 = vst [vmem:[%s1859_s18 + $0x3f8] sm:$0xff] %v1294_v32 }
 0x15e PF: > { %s13_s12 = sadd.s32 1, %s1585_s12  }
 0x15f   : > { %p10_p4 = scmp.ge.s32.totalorder %s13_s12, 9  }
 0x161   :  { %12 = sbr.rel (!%p10_p4) target bundleno = 1 (0x1), region = 62 }

</bundles_post_ra>
